<compile_context>
chip_gen: v7x
topology: tpu7x:2x2x1
jax: 0.10.0
libtpu: 0.0.40
codegen_flags: <defaults>
</compile_context>

<pallas_src>
import functools

import numpy as np
import jax
import jax.numpy as jnp
from jax import lax
from jax.experimental import pallas as pl
from jax.experimental.pallas import tpu as pltpu

_LN_EPS = 1e-5
_NEG_INF = -1e30   # large finite negative (avoids NaN rows)


def _layernorm(x, gamma, beta):
    # LayerNorm over last dim, eps=1e-5 (PyTorch default), biased variance.
    mu = jnp.mean(x, axis=-1, keepdims=True)
    xc = x - mu
    var = jnp.mean(xc * xc, axis=-1, keepdims=True)
    return xc * lax.rsqrt(var + _LN_EPS) * gamma + beta


# ------------------------------ fused kernel ------------------------------- #

def _block_kernel(x_ref, ln1g_ref, ln1b_ref, wqkv_ref, wp_ref, bp_ref,
                  bias_ref, ln2g_ref, ln2b_ref, wrn_ref, brn_ref, noise_ref,
                  w1_ref, b1_ref, w2_ref, b2_ref, o_ref,
                  *, n_head, head_dim, num_experts, top_k, ffn):
    x = x_ref[...]                                          # (N, C), N = B*T
    N, C = x.shape

    # ---------------- branch 1: x1 = x + MHA(LN1(x)) ---------------------- #
    xn = _layernorm(x, ln1g_ref[...], ln1b_ref[...])
    # one packed QKV matmul: (N, C) @ (C, 3C)
    qkv = jnp.dot(xn, wqkv_ref[...], preferred_element_type=jnp.float32)
    q_all = qkv[:, :C]
    k_all = qkv[:, C:2 * C]
    v_all = qkv[:, 2 * C:]

    scale = float(head_dim) ** -0.5
    bias = bias_ref[...]                                    # (N, N) additive mask
    heads = []
    # H=4: tiny static loop (only the per-head score/softmax/AV remains here;
    # TODO(synk): switch to lax.fori_loop(..., unroll=True) at larger H/T to
    # bound vreg live ranges).
    for h in range(n_head):
        sl = slice(h * head_dim, (h + 1) * head_dim)
        q = q_all[:, sl]
        k = k_all[:, sl]
        v = v_all[:, sl]
        # q @ k^T via dot_general contracting dims — no explicit transpose.
        s = lax.dot_general(q, k, (((1,), (1,)), ((), ())),
                            preferred_element_type=jnp.float32)
        s = s * scale + bias                                # causal + same-seq mask
        m = jnp.max(s, axis=-1, keepdims=True)
        p = jnp.exp(s - m)
        p = p / jnp.sum(p, axis=-1, keepdims=True)          # exact normalization
        heads.append(jnp.dot(p, v, preferred_element_type=jnp.float32))
    o_all = jnp.concatenate(heads, axis=-1)                 # (N, C)
    x1 = x + jnp.dot(o_all, wp_ref[...],
                     preferred_element_type=jnp.float32) + bp_ref[...]

    # ---------------- branch 2: out = x1 + SparseMoE(LN2(x1)) ------------- #
    xn2 = _layernorm(x1, ln2g_ref[...], ln2b_ref[...])

    # fused router: (N, C) @ (C, 2E) = [logits | noise_logits]
    rn = jnp.dot(xn2, wrn_ref[...],
                 preferred_element_type=jnp.float32) + brn_ref[...]
    logits = rn[:, :num_experts]
    noise_logits = rn[:, num_experts:]
    softplus = jnp.maximum(noise_logits, 0.0) + jnp.log(
        1.0 + jnp.exp(-jnp.abs(noise_logits)))
    noisy = logits + noise_ref[...] * softplus              # (N, E)

    # top-k threshold per row (ties have prob. zero with continuous noise).
    work = noisy
    for _ in range(top_k - 1):
        rmax = jnp.max(work, axis=-1, keepdims=True)
        work = jnp.where(work >= rmax, _NEG_INF, work)
    kth = jnp.max(work, axis=-1, keepdims=True)
    sparse = jnp.where(noisy >= kth, noisy, _NEG_INF)       # -inf off top-k
    m = jnp.max(sparse, axis=-1, keepdims=True)
    pe = jnp.exp(sparse - m)
    gates = pe / jnp.sum(pe, axis=-1, keepdims=True)        # (N, E), exact

    # packed experts: up-projection for all experts at once, (N, C)@(C, E*FF)
    h1 = jnp.dot(xn2, w1_ref[...],
                 preferred_element_type=jnp.float32) + b1_ref[...]
    h1 = jnp.maximum(h1, 0.0)                               # (N, E*FF)
    # gate each 128-lane expert chunk with a static lane slice of `gates`
    # (no where+sum cross-lane reduction).
    gated = jnp.concatenate(
        [h1[:, e * ffn:(e + 1) * ffn] * gates[:, e:e + 1]
         for e in range(num_experts)], axis=-1)             # (N, E*FF)
    # packed down-projection: (N, E*FF) @ (E*FF, C); gated bias = gates @ b2.
    y = jnp.dot(gated, w2_ref[...], preferred_element_type=jnp.float32)
    y = y + jnp.dot(gates, b2_ref[...], preferred_element_type=jnp.float32)

    o_ref[...] = x1 + y


# ------------------------------ wrappers ----------------------------------- #

def pack_params(p):
    """One-time re-layout of the module weights into packed, lane-dense mats."""
    C = p["wq"].shape[0]
    E, _, FF = p["w1"].shape
    return {
        "ln1_g": p["ln1_g"].reshape(1, C), "ln1_b": p["ln1_b"].reshape(1, C),
        "ln2_g": p["ln2_g"].reshape(1, C), "ln2_b": p["ln2_b"].reshape(1, C),
        # [Wq | Wk | Wv] : (C, 3C); columns h*hd:(h+1)*hd of each belong to head h
        "wqkv": jnp.concatenate([p["wq"], p["wk"], p["wv"]], axis=1),
        "wp": p["wp"], "bp": p["bp"].reshape(1, C),
        # [Wr | Wn] : (C, 2E)
        "wrn": jnp.concatenate([p["wr"], p["wn"]], axis=1),
        "brn": jnp.concatenate([p["br"], p["bn"]]).reshape(1, 2 * E),
        # up-proj concat along columns: (C, E*FF); down-proj stacked rows: (E*FF, C)
        "w1": jnp.transpose(p["w1"], (1, 0, 2)).reshape(C, E * FF),
        "b1": p["b1"].reshape(1, E * FF),
        "w2": p["w2"].reshape(E * FF, C),
        "b2": p["b2"],                                       # (E, C)
    }


def _attn_bias(batch, seq_len):
    """Additive mask: 0 where (same sequence AND causal), -1e30 elsewhere."""
    n = batch * seq_len
    rows = np.arange(n)[:, None]
    cols = np.arange(n)[None, :]
    allowed = (cols <= rows) & ((rows // seq_len) == (cols // seq_len))
    return jnp.asarray(np.where(allowed, 0.0, _NEG_INF), dtype=jnp.float32)


def block_forward(x, noise, packed, *, n_head, top_k):
    B, T, C = x.shape
    E = packed["wrn"].shape[1] // 2
    FF = packed["b1"].shape[1] // E
    N = B * T

    kernel = functools.partial(
        _block_kernel, n_head=n_head, head_dim=C // n_head,
        num_experts=E, top_k=top_k, ffn=FF)

    vmem = pl.BlockSpec(memory_space=pltpu.MemorySpace.VMEM)
    # Single fused call, no grid: whole (B*T, C) token slab + all weights live
    # in VMEM for one step.  (~200 KiB total, far under any VMEM limit; on v7x
    # the absence of a grid also means nothing is double-buffered.)
    # TODO(synk): for v6e/v7x at larger C/FF, cast matmul operands to bf16
    # (keep f32 accumulation) and tile experts/FF over an 'arbitrary' grid axis.
    out = pl.pallas_call(
        kernel,
        out_shape=jax.ShapeDtypeStruct((N, C), jnp.float32),
        in_specs=[vmem] * 16,
        out_specs=vmem,
    )(x.reshape(N, C),
      packed["ln1_g"], packed["ln1_b"], packed["wqkv"], packed["wp"],
      packed["bp"], _attn_bias(B, T),
      packed["ln2_g"], packed["ln2_b"], packed["wrn"], packed["brn"],
      noise.reshape(N, E),
      packed["w1"], packed["b1"], packed["w2"], packed["b2"])
    return out.reshape(B, T, C)


# ------------------------------ driver ------------------------------------- #

def init_params(key, n_embed, n_head, num_experts):
    C, E = n_embed, num_experts
    FF = 4 * C
    ks = jax.random.split(key, 12)
    s = 0.02
    return {
        "ln1_g": jnp.ones((C,), jnp.float32),
        "ln1_b": jnp.zeros((C,), jnp.float32),
        "ln2_g": jnp.ones((C,), jnp.float32),
        "ln2_b": jnp.zeros((C,), jnp.float32),
        # attention: q/k/v are (C, C) with columns h*hd:(h+1)*hd = head h
        # (no bias); output projection (C, C) with bias.
        "wq": s * jax.random.normal(ks[0], (C, C), jnp.float32),
        "wk": s * jax.random.normal(ks[1], (C, C), jnp.float32),
        "wv": s * jax.random.normal(ks[2], (C, C), jnp.float32),
        "wp": s * jax.random.normal(ks[3], (C, C), jnp.float32),
        "bp": s * jax.random.normal(ks[4], (C,), jnp.float32),
        # router
        "wr": s * jax.random.normal(ks[5], (C, E), jnp.float32),
        "br": jnp.zeros((E,), jnp.float32),
        "wn": s * jax.random.normal(ks[6], (C, E), jnp.float32),
        "bn": jnp.zeros((E,), jnp.float32),
        # experts
        "w1": s * jax.random.normal(ks[7], (E, C, FF), jnp.float32),
        "b1": s * jax.random.normal(ks[8], (E, FF), jnp.float32),
        "w2": s * jax.random.normal(ks[9], (E, FF, C), jnp.float32),
        "b2": s * jax.random.normal(ks[10], (E, C), jnp.float32),
    }


if __name__ == "__main__":
    B, T, C = 2, 8, 32          # batch, seq, n_embed
    n_head, num_experts, top_k = 4, 4, 2

    key = jax.random.PRNGKey(0)
    kx, kn, kp = jax.random.split(key, 3)
    x = jax.random.normal(kx, (B, T, C), jnp.float32)
    # router noise (torch.randn_like equivalent), generated deterministically
    noise = jax.random.normal(kn, (B, T, num_experts), jnp.float32)
    params = init_params(kp, C, n_head, num_experts)
    packed = pack_params(params)   # one-time weight re-layout (outside kernel)

    fwd = jax.jit(functools.partial(block_forward, n_head=n_head, top_k=top_k))
    out = fwd(x, noise, packed)
    jax.block_until_ready(out)
    assert out.shape == (B, T, C) and bool(jnp.all(jnp.isfinite(out)))
    # TODO(synk): dropout layers are treated as identity (eval mode); the
    # reference's buggy `final_output = expert_output * gating_scores`
    # overwrite is implemented with the intended accumulate semantics.
    print("KERNEL_OK")
</pallas_src>

<mosaic_0001>
module attributes {stable_mosaic.version = 11 : i64} {
  func.func @_block_kernel(%arg0: memref<16x32xf32, #tpu.memory_space<vmem>>, %arg1: memref<1x32xf32, #tpu.memory_space<vmem>>, %arg2: memref<1x32xf32, #tpu.memory_space<vmem>>, %arg3: memref<32x96xf32, #tpu.memory_space<vmem>>, %arg4: memref<32x32xf32, #tpu.memory_space<vmem>>, %arg5: memref<1x32xf32, #tpu.memory_space<vmem>>, %arg6: memref<16x16xf32, #tpu.memory_space<vmem>>, %arg7: memref<1x32xf32, #tpu.memory_space<vmem>>, %arg8: memref<1x32xf32, #tpu.memory_space<vmem>>, %arg9: memref<32x8xf32, #tpu.memory_space<vmem>>, %arg10: memref<1x8xf32, #tpu.memory_space<vmem>>, %arg11: memref<16x4xf32, #tpu.memory_space<vmem>>, %arg12: memref<32x512xf32, #tpu.memory_space<vmem>>, %arg13: memref<1x512xf32, #tpu.memory_space<vmem>>, %arg14: memref<512x32xf32, #tpu.memory_space<vmem>>, %arg15: memref<4x32xf32, #tpu.memory_space<vmem>>, %arg16: memref<16x32xf32, #tpu.memory_space<vmem>>) attributes {dimension_semantics = [], scalar_prefetch = 0 : i64, scratch_operands = 0 : i64, tpu.core_type = #tpu.core_type<tc>} {
    %c0 = arith.constant 0 : index
    %c0_0 = arith.constant 0 : index
    %0 = vector.load %arg0[%c0, %c0_0] : memref<16x32xf32, #tpu.memory_space<vmem>>, vector<16x32xf32>
    %c0_1 = arith.constant 0 : index
    %c0_2 = arith.constant 0 : index
    %1 = vector.load %arg1[%c0_1, %c0_2] : memref<1x32xf32, #tpu.memory_space<vmem>>, vector<1x32xf32>
    %c0_3 = arith.constant 0 : index
    %c0_4 = arith.constant 0 : index
    %2 = vector.load %arg2[%c0_3, %c0_4] : memref<1x32xf32, #tpu.memory_space<vmem>>, vector<1x32xf32>
    %cst = arith.constant dense<0.000000e+00> : vector<16xf32>
    %3 = vector.multi_reduction <add>, %0, %cst [1] : vector<16x32xf32> to vector<16xf32>
    %4 = vector.shape_cast %3 : vector<16xf32> to vector<16x1xf32>
    %cst_5 = arith.constant 3.200000e+01 : f32
    %5 = vector.broadcast %cst_5 : f32 to vector<16x1xf32>
    %6 = arith.divf %4, %5 : vector<16x1xf32>
    %7 = vector.broadcast %6 : vector<16x1xf32> to vector<16x32xf32>
    %8 = arith.subf %0, %7 : vector<16x32xf32>
    %9 = arith.mulf %8, %8 : vector<16x32xf32>
    %cst_6 = arith.constant dense<0.000000e+00> : vector<16xf32>
    %10 = vector.multi_reduction <add>, %9, %cst_6 [1] : vector<16x32xf32> to vector<16xf32>
    %11 = vector.shape_cast %10 : vector<16xf32> to vector<16x1xf32>
    %cst_7 = arith.constant 3.200000e+01 : f32
    %12 = vector.broadcast %cst_7 : f32 to vector<16x1xf32>
    %13 = arith.divf %11, %12 : vector<16x1xf32>
    %cst_8 = arith.constant 9.99999974E-6 : f32
    %14 = vector.broadcast %cst_8 : f32 to vector<16x1xf32>
    %15 = arith.addf %13, %14 : vector<16x1xf32>
    %16 = math.rsqrt %15 : vector<16x1xf32>
    %17 = vector.broadcast %16 : vector<16x1xf32> to vector<16x32xf32>
    %18 = arith.mulf %8, %17 : vector<16x32xf32>
    %19 = vector.broadcast %1 : vector<1x32xf32> to vector<16x32xf32>
    %20 = arith.mulf %18, %19 : vector<16x32xf32>
    %21 = vector.broadcast %2 : vector<1x32xf32> to vector<16x32xf32>
    %22 = arith.addf %20, %21 : vector<16x32xf32>
    %c0_9 = arith.constant 0 : index
    %c0_10 = arith.constant 0 : index
    %23 = vector.load %arg3[%c0_9, %c0_10] : memref<32x96xf32, #tpu.memory_space<vmem>>, vector<32x96xf32>
    %cst_11 = arith.constant dense<0.000000e+00> : vector<16x96xf32>
    %24 = tpu.matmul %22, %23, %cst_11 {dimension_numbers = #tpu.dot_dimension_numbers<[1], [0], [0], [1], [0, 0, 1, 1], [], []>} : vector<16x32xf32>, vector<32x96xf32>, vector<16x96xf32> -> vector<16x96xf32>
    %25 = vector.extract_strided_slice %24 {offsets = [0, 0], sizes = [16, 32], strides = [1, 1]} : vector<16x96xf32> to vector<16x32xf32>
    %26 = vector.extract_strided_slice %24 {offsets = [0, 32], sizes = [16, 32], strides = [1, 1]} : vector<16x96xf32> to vector<16x32xf32>
    %27 = vector.extract_strided_slice %24 {offsets = [0, 64], sizes = [16, 32], strides = [1, 1]} : vector<16x96xf32> to vector<16x32xf32>
    %c0_12 = arith.constant 0 : index
    %c0_13 = arith.constant 0 : index
    %28 = vector.load %arg6[%c0_12, %c0_13] : memref<16x16xf32, #tpu.memory_space<vmem>>, vector<16x16xf32>
    %29 = vector.extract_strided_slice %25 {offsets = [0, 0], sizes = [16, 8], strides = [1, 1]} : vector<16x32xf32> to vector<16x8xf32>
    %30 = vector.extract_strided_slice %26 {offsets = [0, 0], sizes = [16, 8], strides = [1, 1]} : vector<16x32xf32> to vector<16x8xf32>
    %31 = vector.extract_strided_slice %27 {offsets = [0, 0], sizes = [16, 8], strides = [1, 1]} : vector<16x32xf32> to vector<16x8xf32>
    %cst_14 = arith.constant dense<0.000000e+00> : vector<16x16xf32>
    %32 = tpu.matmul %29, %30, %cst_14 {dimension_numbers = #tpu.dot_dimension_numbers<[1], [1], [0], [0], [0, 0, 1, 0], [], []>} : vector<16x8xf32>, vector<16x8xf32>, vector<16x16xf32> -> vector<16x16xf32>
    %cst_15 = arith.constant 0.353553385 : f32
    %33 = vector.broadcast %cst_15 : f32 to vector<16x16xf32>
    %34 = arith.mulf %32, %33 : vector<16x16xf32>
    %35 = arith.addf %34, %28 : vector<16x16xf32>
    %cst_16 = arith.constant dense<0xFF800000> : vector<16xf32>
    %36 = vector.multi_reduction <maximumf>, %35, %cst_16 [1] : vector<16x16xf32> to vector<16xf32>
    %37 = vector.shape_cast %36 : vector<16xf32> to vector<16x1xf32>
    %38 = vector.broadcast %37 : vector<16x1xf32> to vector<16x16xf32>
    %39 = arith.subf %35, %38 : vector<16x16xf32>
    %40 = math.exp %39 : vector<16x16xf32>
    %cst_17 = arith.constant dense<0.000000e+00> : vector<16xf32>
    %41 = vector.multi_reduction <add>, %40, %cst_17 [1] : vector<16x16xf32> to vector<16xf32>
    %42 = vector.shape_cast %41 : vector<16xf32> to vector<16x1xf32>
    %43 = vector.broadcast %42 : vector<16x1xf32> to vector<16x16xf32>
    %44 = arith.divf %40, %43 : vector<16x16xf32>
    %cst_18 = arith.constant dense<0.000000e+00> : vector<16x8xf32>
    %45 = tpu.matmul %44, %31, %cst_18 {dimension_numbers = #tpu.dot_dimension_numbers<[1], [0], [0], [1], [0, 0, 1, 1], [], []>} : vector<16x16xf32>, vector<16x8xf32>, vector<16x8xf32> -> vector<16x8xf32>
    %46 = vector.extract_strided_slice %25 {offsets = [0, 8], sizes = [16, 8], strides = [1, 1]} : vector<16x32xf32> to vector<16x8xf32>
    %47 = vector.extract_strided_slice %26 {offsets = [0, 8], sizes = [16, 8], strides = [1, 1]} : vector<16x32xf32> to vector<16x8xf32>
    %48 = vector.extract_strided_slice %27 {offsets = [0, 8], sizes = [16, 8], strides = [1, 1]} : vector<16x32xf32> to vector<16x8xf32>
    %cst_19 = arith.constant dense<0.000000e+00> : vector<16x16xf32>
    %49 = tpu.matmul %46, %47, %cst_19 {dimension_numbers = #tpu.dot_dimension_numbers<[1], [1], [0], [0], [0, 0, 1, 0], [], []>} : vector<16x8xf32>, vector<16x8xf32>, vector<16x16xf32> -> vector<16x16xf32>
    %cst_20 = arith.constant 0.353553385 : f32
    %50 = vector.broadcast %cst_20 : f32 to vector<16x16xf32>
    %51 = arith.mulf %49, %50 : vector<16x16xf32>
    %52 = arith.addf %51, %28 : vector<16x16xf32>
    %cst_21 = arith.constant dense<0xFF800000> : vector<16xf32>
    %53 = vector.multi_reduction <maximumf>, %52, %cst_21 [1] : vector<16x16xf32> to vector<16xf32>
    %54 = vector.shape_cast %53 : vector<16xf32> to vector<16x1xf32>
    %55 = vector.broadcast %54 : vector<16x1xf32> to vector<16x16xf32>
    %56 = arith.subf %52, %55 : vector<16x16xf32>
    %57 = math.exp %56 : vector<16x16xf32>
    %cst_22 = arith.constant dense<0.000000e+00> : vector<16xf32>
    %58 = vector.multi_reduction <add>, %57, %cst_22 [1] : vector<16x16xf32> to vector<16xf32>
    %59 = vector.shape_cast %58 : vector<16xf32> to vector<16x1xf32>
    %60 = vector.broadcast %59 : vector<16x1xf32> to vector<16x16xf32>
    %61 = arith.divf %57, %60 : vector<16x16xf32>
    %cst_23 = arith.constant dense<0.000000e+00> : vector<16x8xf32>
    %62 = tpu.matmul %61, %48, %cst_23 {dimension_numbers = #tpu.dot_dimension_numbers<[1], [0], [0], [1], [0, 0, 1, 1], [], []>} : vector<16x16xf32>, vector<16x8xf32>, vector<16x8xf32> -> vector<16x8xf32>
    %63 = vector.extract_strided_slice %25 {offsets = [0, 16], sizes = [16, 8], strides = [1, 1]} : vector<16x32xf32> to vector<16x8xf32>
    %64 = vector.extract_strided_slice %26 {offsets = [0, 16], sizes = [16, 8], strides = [1, 1]} : vector<16x32xf32> to vector<16x8xf32>
    %65 = vector.extract_strided_slice %27 {offsets = [0, 16], sizes = [16, 8], strides = [1, 1]} : vector<16x32xf32> to vector<16x8xf32>
    %cst_24 = arith.constant dense<0.000000e+00> : vector<16x16xf32>
    %66 = tpu.matmul %63, %64, %cst_24 {dimension_numbers = #tpu.dot_dimension_numbers<[1], [1], [0], [0], [0, 0, 1, 0], [], []>} : vector<16x8xf32>, vector<16x8xf32>, vector<16x16xf32> -> vector<16x16xf32>
    %cst_25 = arith.constant 0.353553385 : f32
    %67 = vector.broadcast %cst_25 : f32 to vector<16x16xf32>
    %68 = arith.mulf %66, %67 : vector<16x16xf32>
    %69 = arith.addf %68, %28 : vector<16x16xf32>
    %cst_26 = arith.constant dense<0xFF800000> : vector<16xf32>
    %70 = vector.multi_reduction <maximumf>, %69, %cst_26 [1] : vector<16x16xf32> to vector<16xf32>
    %71 = vector.shape_cast %70 : vector<16xf32> to vector<16x1xf32>
    %72 = vector.broadcast %71 : vector<16x1xf32> to vector<16x16xf32>
    %73 = arith.subf %69, %72 : vector<16x16xf32>
    %74 = math.exp %73 : vector<16x16xf32>
    %cst_27 = arith.constant dense<0.000000e+00> : vector<16xf32>
    %75 = vector.multi_reduction <add>, %74, %cst_27 [1] : vector<16x16xf32> to vector<16xf32>
    %76 = vector.shape_cast %75 : vector<16xf32> to vector<16x1xf32>
    %77 = vector.broadcast %76 : vector<16x1xf32> to vector<16x16xf32>
    %78 = arith.divf %74, %77 : vector<16x16xf32>
    %cst_28 = arith.constant dense<0.000000e+00> : vector<16x8xf32>
    %79 = tpu.matmul %78, %65, %cst_28 {dimension_numbers = #tpu.dot_dimension_numbers<[1], [0], [0], [1], [0, 0, 1, 1], [], []>} : vector<16x16xf32>, vector<16x8xf32>, vector<16x8xf32> -> vector<16x8xf32>
    %80 = vector.extract_strided_slice %25 {offsets = [0, 24], sizes = [16, 8], strides = [1, 1]} : vector<16x32xf32> to vector<16x8xf32>
    %81 = vector.extract_strided_slice %26 {offsets = [0, 24], sizes = [16, 8], strides = [1, 1]} : vector<16x32xf32> to vector<16x8xf32>
    %82 = vector.extract_strided_slice %27 {offsets = [0, 24], sizes = [16, 8], strides = [1, 1]} : vector<16x32xf32> to vector<16x8xf32>
    %cst_29 = arith.constant dense<0.000000e+00> : vector<16x16xf32>
    %83 = tpu.matmul %80, %81, %cst_29 {dimension_numbers = #tpu.dot_dimension_numbers<[1], [1], [0], [0], [0, 0, 1, 0], [], []>} : vector<16x8xf32>, vector<16x8xf32>, vector<16x16xf32> -> vector<16x16xf32>
    %cst_30 = arith.constant 0.353553385 : f32
    %84 = vector.broadcast %cst_30 : f32 to vector<16x16xf32>
    %85 = arith.mulf %83, %84 : vector<16x16xf32>
    %86 = arith.addf %85, %28 : vector<16x16xf32>
    %cst_31 = arith.constant dense<0xFF800000> : vector<16xf32>
    %87 = vector.multi_reduction <maximumf>, %86, %cst_31 [1] : vector<16x16xf32> to vector<16xf32>
    %88 = vector.shape_cast %87 : vector<16xf32> to vector<16x1xf32>
    %89 = vector.broadcast %88 : vector<16x1xf32> to vector<16x16xf32>
    %90 = arith.subf %86, %89 : vector<16x16xf32>
    %91 = math.exp %90 : vector<16x16xf32>
    %cst_32 = arith.constant dense<0.000000e+00> : vector<16xf32>
    %92 = vector.multi_reduction <add>, %91, %cst_32 [1] : vector<16x16xf32> to vector<16xf32>
    %93 = vector.shape_cast %92 : vector<16xf32> to vector<16x1xf32>
    %94 = vector.broadcast %93 : vector<16x1xf32> to vector<16x16xf32>
    %95 = arith.divf %91, %94 : vector<16x16xf32>
    %cst_33 = arith.constant dense<0.000000e+00> : vector<16x8xf32>
    %96 = tpu.matmul %95, %82, %cst_33 {dimension_numbers = #tpu.dot_dimension_numbers<[1], [0], [0], [1], [0, 0, 1, 1], [], []>} : vector<16x16xf32>, vector<16x8xf32>, vector<16x8xf32> -> vector<16x8xf32>
    %97 = tpu.concatenate %45, %62, %79, %96 in 1 : vector<16x8xf32>, vector<16x8xf32>, vector<16x8xf32>, vector<16x8xf32> -> vector<16x32xf32>
    %c0_34 = arith.constant 0 : index
    %c0_35 = arith.constant 0 : index
    %98 = vector.load %arg4[%c0_34, %c0_35] : memref<32x32xf32, #tpu.memory_space<vmem>>, vector<32x32xf32>
    %cst_36 = arith.constant dense<0.000000e+00> : vector<16x32xf32>
    %99 = tpu.matmul %97, %98, %cst_36 {dimension_numbers = #tpu.dot_dimension_numbers<[1], [0], [0], [1], [0, 0, 1, 1], [], []>} : vector<16x32xf32>, vector<32x32xf32>, vector<16x32xf32> -> vector<16x32xf32>
    %100 = arith.addf %0, %99 : vector<16x32xf32>
    %c0_37 = arith.constant 0 : index
    %c0_38 = arith.constant 0 : index
    %101 = vector.load %arg5[%c0_37, %c0_38] : memref<1x32xf32, #tpu.memory_space<vmem>>, vector<1x32xf32>
    %102 = vector.broadcast %101 : vector<1x32xf32> to vector<16x32xf32>
    %103 = arith.addf %100, %102 : vector<16x32xf32>
    %c0_39 = arith.constant 0 : index
    %c0_40 = arith.constant 0 : index
    %104 = vector.load %arg7[%c0_39, %c0_40] : memref<1x32xf32, #tpu.memory_space<vmem>>, vector<1x32xf32>
    %c0_41 = arith.constant 0 : index
    %c0_42 = arith.constant 0 : index
    %105 = vector.load %arg8[%c0_41, %c0_42] : memref<1x32xf32, #tpu.memory_space<vmem>>, vector<1x32xf32>
    %cst_43 = arith.constant dense<0.000000e+00> : vector<16xf32>
    %106 = vector.multi_reduction <add>, %103, %cst_43 [1] : vector<16x32xf32> to vector<16xf32>
    %107 = vector.shape_cast %106 : vector<16xf32> to vector<16x1xf32>
    %cst_44 = arith.constant 3.200000e+01 : f32
    %108 = vector.broadcast %cst_44 : f32 to vector<16x1xf32>
    %109 = arith.divf %107, %108 : vector<16x1xf32>
    %110 = vector.broadcast %109 : vector<16x1xf32> to vector<16x32xf32>
    %111 = arith.subf %103, %110 : vector<16x32xf32>
    %112 = arith.mulf %111, %111 : vector<16x32xf32>
    %cst_45 = arith.constant dense<0.000000e+00> : vector<16xf32>
    %113 = vector.multi_reduction <add>, %112, %cst_45 [1] : vector<16x32xf32> to vector<16xf32>
    %114 = vector.shape_cast %113 : vector<16xf32> to vector<16x1xf32>
    %cst_46 = arith.constant 3.200000e+01 : f32
    %115 = vector.broadcast %cst_46 : f32 to vector<16x1xf32>
    %116 = arith.divf %114, %115 : vector<16x1xf32>
    %cst_47 = arith.constant 9.99999974E-6 : f32
    %117 = vector.broadcast %cst_47 : f32 to vector<16x1xf32>
    %118 = arith.addf %116, %117 : vector<16x1xf32>
    %119 = math.rsqrt %118 : vector<16x1xf32>
    %120 = vector.broadcast %119 : vector<16x1xf32> to vector<16x32xf32>
    %121 = arith.mulf %111, %120 : vector<16x32xf32>
    %122 = vector.broadcast %104 : vector<1x32xf32> to vector<16x32xf32>
    %123 = arith.mulf %121, %122 : vector<16x32xf32>
    %124 = vector.broadcast %105 : vector<1x32xf32> to vector<16x32xf32>
    %125 = arith.addf %123, %124 : vector<16x32xf32>
    %c0_48 = arith.constant 0 : index
    %c0_49 = arith.constant 0 : index
    %126 = vector.load %arg9[%c0_48, %c0_49] : memref<32x8xf32, #tpu.memory_space<vmem>>, vector<32x8xf32>
    %cst_50 = arith.constant dense<0.000000e+00> : vector<16x8xf32>
    %127 = tpu.matmul %125, %126, %cst_50 {dimension_numbers = #tpu.dot_dimension_numbers<[1], [0], [0], [1], [0, 0, 1, 1], [], []>} : vector<16x32xf32>, vector<32x8xf32>, vector<16x8xf32> -> vector<16x8xf32>
    %c0_51 = arith.constant 0 : index
    %c0_52 = arith.constant 0 : index
    %128 = vector.load %arg10[%c0_51, %c0_52] : memref<1x8xf32, #tpu.memory_space<vmem>>, vector<1x8xf32>
    %129 = vector.broadcast %128 : vector<1x8xf32> to vector<16x8xf32>
    %130 = arith.addf %127, %129 : vector<16x8xf32>
    %131 = vector.extract_strided_slice %130 {offsets = [0, 0], sizes = [16, 4], strides = [1, 1]} : vector<16x8xf32> to vector<16x4xf32>
    %132 = vector.extract_strided_slice %130 {offsets = [0, 4], sizes = [16, 4], strides = [1, 1]} : vector<16x8xf32> to vector<16x4xf32>
    %cst_53 = arith.constant 0.000000e+00 : f32
    %133 = vector.broadcast %cst_53 : f32 to vector<16x4xf32>
    %134 = arith.maximumf %132, %133 : vector<16x4xf32>
    %135 = math.absf %132 : vector<16x4xf32>
    %cst_54 = arith.constant 0.000000e+00 : f32
    %136 = vector.broadcast %cst_54 : f32 to vector<16x4xf32>
    %137 = arith.subf %136, %135 : vector<16x4xf32>
    %138 = math.exp %137 : vector<16x4xf32>
    %cst_55 = arith.constant 1.000000e+00 : f32
    %139 = vector.broadcast %cst_55 : f32 to vector<16x4xf32>
    %140 = arith.addf %139, %138 : vector<16x4xf32>
    %141 = math.log %140 : vector<16x4xf32>
    %142 = arith.addf %134, %141 : vector<16x4xf32>
    %c0_56 = arith.constant 0 : index
    %c0_57 = arith.constant 0 : index
    %143 = vector.load %arg11[%c0_56, %c0_57] : memref<16x4xf32, #tpu.memory_space<vmem>>, vector<16x4xf32>
    %144 = arith.mulf %143, %142 : vector<16x4xf32>
    %145 = arith.addf %131, %144 : vector<16x4xf32>
    %cst_58 = arith.constant dense<0xFF800000> : vector<16xf32>
    %146 = vector.multi_reduction <maximumf>, %145, %cst_58 [1] : vector<16x4xf32> to vector<16xf32>
    %147 = vector.shape_cast %146 : vector<16xf32> to vector<16x1xf32>
    %148 = vector.broadcast %147 : vector<16x1xf32> to vector<16x4xf32>
    %149 = arith.cmpf oge, %145, %148 : vector<16x4xf32>
    %cst_59 = arith.constant -1.000000e+30 : f32
    %150 = vector.broadcast %cst_59 : f32 to vector<16x4xf32>
    %151 = arith.select %149, %150, %145 : vector<16x4xi1>, vector<16x4xf32>
    %cst_60 = arith.constant dense<0xFF800000> : vector<16xf32>
    %152 = vector.multi_reduction <maximumf>, %151, %cst_60 [1] : vector<16x4xf32> to vector<16xf32>
    %153 = vector.shape_cast %152 : vector<16xf32> to vector<16x1xf32>
    %154 = vector.broadcast %153 : vector<16x1xf32> to vector<16x4xf32>
    %155 = arith.cmpf oge, %145, %154 : vector<16x4xf32>
    %cst_61 = arith.constant -1.000000e+30 : f32
    %156 = vector.broadcast %cst_61 : f32 to vector<16x4xf32>
    %157 = arith.select %155, %145, %156 : vector<16x4xi1>, vector<16x4xf32>
    %cst_62 = arith.constant dense<0xFF800000> : vector<16xf32>
    %158 = vector.multi_reduction <maximumf>, %157, %cst_62 [1] : vector<16x4xf32> to vector<16xf32>
    %159 = vector.shape_cast %158 : vector<16xf32> to vector<16x1xf32>
    %160 = vector.broadcast %159 : vector<16x1xf32> to vector<16x4xf32>
    %161 = arith.subf %157, %160 : vector<16x4xf32>
    %162 = math.exp %161 : vector<16x4xf32>
    %cst_63 = arith.constant dense<0.000000e+00> : vector<16xf32>
    %163 = vector.multi_reduction <add>, %162, %cst_63 [1] : vector<16x4xf32> to vector<16xf32>
    %164 = vector.shape_cast %163 : vector<16xf32> to vector<16x1xf32>
    %165 = vector.broadcast %164 : vector<16x1xf32> to vector<16x4xf32>
    %166 = arith.divf %162, %165 : vector<16x4xf32>
    %c0_64 = arith.constant 0 : index
    %c0_65 = arith.constant 0 : index
    %167 = vector.load %arg12[%c0_64, %c0_65] : memref<32x512xf32, #tpu.memory_space<vmem>>, vector<32x512xf32>
    %cst_66 = arith.constant dense<0.000000e+00> : vector<16x512xf32>
    %168 = tpu.matmul %125, %167, %cst_66 {dimension_numbers = #tpu.dot_dimension_numbers<[1], [0], [0], [1], [0, 0, 1, 1], [], []>} : vector<16x32xf32>, vector<32x512xf32>, vector<16x512xf32> -> vector<16x512xf32>
    %c0_67 = arith.constant 0 : index
    %c0_68 = arith.constant 0 : index
    %169 = vector.load %arg13[%c0_67, %c0_68] : memref<1x512xf32, #tpu.memory_space<vmem>>, vector<1x512xf32>
    %170 = vector.broadcast %169 : vector<1x512xf32> to vector<16x512xf32>
    %171 = arith.addf %168, %170 : vector<16x512xf32>
    %cst_69 = arith.constant 0.000000e+00 : f32
    %172 = vector.broadcast %cst_69 : f32 to vector<16x512xf32>
    %173 = arith.maximumf %171, %172 : vector<16x512xf32>
    %174 = vector.extract_strided_slice %173 {offsets = [0, 0], sizes = [16, 128], strides = [1, 1]} : vector<16x512xf32> to vector<16x128xf32>
    %175 = vector.extract_strided_slice %166 {offsets = [0, 0], sizes = [16, 1], strides = [1, 1]} : vector<16x4xf32> to vector<16x1xf32>
    %176 = vector.broadcast %175 : vector<16x1xf32> to vector<16x128xf32>
    %177 = arith.mulf %174, %176 : vector<16x128xf32>
    %178 = vector.extract_strided_slice %173 {offsets = [0, 128], sizes = [16, 128], strides = [1, 1]} : vector<16x512xf32> to vector<16x128xf32>
    %179 = vector.extract_strided_slice %166 {offsets = [0, 1], sizes = [16, 1], strides = [1, 1]} : vector<16x4xf32> to vector<16x1xf32>
    %180 = vector.broadcast %179 : vector<16x1xf32> to vector<16x128xf32>
    %181 = arith.mulf %178, %180 : vector<16x128xf32>
    %182 = vector.extract_strided_slice %173 {offsets = [0, 256], sizes = [16, 128], strides = [1, 1]} : vector<16x512xf32> to vector<16x128xf32>
    %183 = vector.extract_strided_slice %166 {offsets = [0, 2], sizes = [16, 1], strides = [1, 1]} : vector<16x4xf32> to vector<16x1xf32>
    %184 = vector.broadcast %183 : vector<16x1xf32> to vector<16x128xf32>
    %185 = arith.mulf %182, %184 : vector<16x128xf32>
    %186 = vector.extract_strided_slice %173 {offsets = [0, 384], sizes = [16, 128], strides = [1, 1]} : vector<16x512xf32> to vector<16x128xf32>
    %187 = vector.extract_strided_slice %166 {offsets = [0, 3], sizes = [16, 1], strides = [1, 1]} : vector<16x4xf32> to vector<16x1xf32>
    %188 = vector.broadcast %187 : vector<16x1xf32> to vector<16x128xf32>
    %189 = arith.mulf %186, %188 : vector<16x128xf32>
    %190 = tpu.concatenate %177, %181, %185, %189 in 1 : vector<16x128xf32>, vector<16x128xf32>, vector<16x128xf32>, vector<16x128xf32> -> vector<16x512xf32>
    %c0_70 = arith.constant 0 : index
    %c0_71 = arith.constant 0 : index
    %191 = vector.load %arg14[%c0_70, %c0_71] : memref<512x32xf32, #tpu.memory_space<vmem>>, vector<512x32xf32>
    %cst_72 = arith.constant dense<0.000000e+00> : vector<16x32xf32>
    %192 = tpu.matmul %190, %191, %cst_72 {dimension_numbers = #tpu.dot_dimension_numbers<[1], [0], [0], [1], [0, 0, 1, 1], [], []>} : vector<16x512xf32>, vector<512x32xf32>, vector<16x32xf32> -> vector<16x32xf32>
    %c0_73 = arith.constant 0 : index
    %c0_74 = arith.constant 0 : index
    %193 = vector.load %arg15[%c0_73, %c0_74] : memref<4x32xf32, #tpu.memory_space<vmem>>, vector<4x32xf32>
    %cst_75 = arith.constant dense<0.000000e+00> : vector<16x32xf32>
    %194 = tpu.matmul %166, %193, %cst_75 {dimension_numbers = #tpu.dot_dimension_numbers<[1], [0], [0], [1], [0, 0, 1, 1], [], []>} : vector<16x4xf32>, vector<4x32xf32>, vector<16x32xf32> -> vector<16x32xf32>
    %195 = arith.addf %192, %194 : vector<16x32xf32>
    %196 = arith.addf %103, %195 : vector<16x32xf32>
    %c0_76 = arith.constant 0 : index
    %c0_77 = arith.constant 0 : index
    %197 = vector.load %arg16[%c0_76, %c0_77] : memref<16x32xf32, #tpu.memory_space<vmem>>, vector<16x32xf32>
    tpu.vector_store %arg16[%c0_76, %c0_77], %196 {strides = array<i32>} : memref<16x32xf32, #tpu.memory_space<vmem>>, vector<16x32xf32>,
    return
  }
}

</mosaic_0001>

<bundles_post_ra>
// kernel: block_forward.1
= control target key start
LH: loop header
LB: loop body
LE: loop exit
PB: predicated region body
PF: predicated region fallthrough
CT: control target
= control target key end

     0   :  { %s3097_s0 = inlined_call_operand.vmem [shape: f32[16,32], index: 0, kind: input, shape index: {}]   ;;  %s3098_s1 = inlined_call_operand.vmem [shape: f32[1,32], index: 1, kind: input, shape index: {}]   ;;  %s3099_s2 = inlined_call_operand.vmem [shape: f32[1,32], index: 2, kind: input, shape index: {}]   ;;  %s3100_s3 = inlined_call_operand.vmem [shape: f32[32,96], index: 3, kind: input, shape index: {}]   ;;  %s3101_s4 = inlined_call_operand.vmem [shape: f32[32,32], index: 4, kind: input, shape index: {}]   ;;  %s3102_s5 = inlined_call_operand.vmem [shape: f32[1,32], index: 5, kind: input, shape index: {}]   ;;  %s3103_s6 = inlined_call_operand.vmem [shape: f32[16,16], index: 6, kind: input, shape index: {}]   ;;  %s3104_s7 = inlined_call_operand.vmem [shape: f32[1,32], index: 7, kind: input, shape index: {}]   ;;  %s3105_s8 = inlined_call_operand.vmem [shape: f32[1,32], index: 8, kind: input, shape index: {}]   ;;  %s3106_s9 = inlined_call_operand.vmem [shape: f32[32,8], index: 9, kind: input, shape index: {}]   ;;  %s3107_s10 = inlined_call_operand.vmem [shape: f32[1,8], index: 10, kind: input, shape index: {}]   ;;  %s3108_s11 = inlined_call_operand.vmem [shape: f32[16,4], index: 11, kind: input, shape index: {}]   ;;  %s3109_s12 = inlined_call_operand.vmem [shape: f32[32,512], index: 12, kind: input, shape index: {}]   ;;  %s3110_s13 = inlined_call_operand.vmem [shape: f32[1,512], index: 13, kind: input, shape index: {}]   ;;  %s3111_s14 = inlined_call_operand.vmem [shape: f32[512,32], index: 14, kind: input, shape index: {}]   ;;  %s3112_s15 = inlined_call_operand.vmem [shape: f32[4,32], index: 15, kind: input, shape index: {}]   ;;  %s3113_s16 = inlined_call_operand.hbm [shape: f32[16,32], index: 16, kind: output, shape index: {}]  }
   0x1   :  { %3115 = sst [smem:[#allocation5_spill]] %s3097_s0 }
   0x2   :  { %s3116_s23 = sld [smem:[#allocation5_spill]]  ;;  %vm58_vm0 = vcmask 261120  }
   0x8   :  { %v2573_v0 = vld [vmem:[%s3116_s23] sm:$0xff]  ;;  %v2578_v1 = vld [vmem:[%s3116_s23 + $0x8] sm:$0xff] }
   0x9   :  { %21 = vsyncpa [#allocation3], 0  ;;  %v59_v2 = vsel %vm58_vm0, %v2573_v0, 0.0  ;;  %v62_v3 = vsel %vm58_vm0, %v2578_v1, 0.0  ;;  %v102_v14 = vld [vmem:[%s3100_s3] sm:$0xff]  ;;  %v103_v15 = vld [vmem:[%s3100_s3 + $0x8] sm:$0xff] }
   0xa   :  { %60 = vadd.xlane.f32.xlu0 %v59_v2  ;;  %v104_v16 = vld [vmem:[%s3100_s3 + $0x10] sm:$0xff]  ;;  %v2169_v17 = vpack.c.bf16 %v103_v15, %v102_v14  ;;  %v105_v18 = vld [vmem:[%s3100_s3 + $0x18] sm:$0xff]  ;;  %v1903_v27 = vld [vmem:[%s3098_s1] ss:$0 sm:$0xff]  ;;  %vm195_vm1 = vcmask 64512   ;;  %s2463_s1 = smov 96  }
   0xb   :  { %v2173_v19 = vpack.c.bf16 %v105_v18, %v104_v16  ;;  %v1904_v29 = vld [vmem:[%s3099_s2] ss:$0 sm:$0xff]  ;;  %s2464_s2 = smov 88   ;;  %s2465_s22 = smov 120   ;;  %vm2624_vm2 = vmpackc.low %vm195_vm1, %vm195_vm1  ;;  %vm283_vm3 = vcmask 130048   ;;  %v2642_v49 = vld [vmem:[%s3103_s6 + $0x8] sm:$0xff] }
   0xc   :  { %2170 = vmatprep.subr.bf16.mxu0 %v2169_v17  ;;  %v2637_v46 = vld [vmem:[%s3103_s6] sm:$0xff]  ;;  %s2466_s6 = smov 64   ;;  %s2467_s27 = smov 56   ;;  %vm1033_vm4 = vcmask 195584   ;;  %vm1300_vm5 = vcmask 31744   ;;  %vm1654_vm10 = vcmask 1043456  }
   0xd   :  { %2172 = vmatpush3.bf16.msra.mxu0 %v2169_v17  ;;  %s2468_s28 = smov 112   ;;  %s2469_s29 = smov 80  }
   0xe   :  { %63 = vadd.xlane.f32.xlu0 %v62_v3  ;;  %2174 = vmatprep.subr.bf16.mxu0 %v2173_v19  ;;  %s2470_s30 = smov 48   ;;  %s2471_s0 = smov 104  }
   0xf   :  { %s2472_s17 = smov 72   ;;  %s2473_s18 = smov 40  }
  0x10   :  { %s2474_s19 = smov 8   ;;  %s2475_s20 = smov 16  }
  0x11   :  { %2176 = vmatpush3.bf16.msra.mxu0 %v2173_v19  ;;  %s2476_s26 = smov 24  }
  0x97   :  { %v61_v4 = vpop.xlane.xlu0 %60 }
  0x98   :  { %v66_v5 = vmul.f32 0.03125, %v61_v4 }
  0x9a   :  { %v68_v6 = vsub.f32 %v2573_v0, %v66_v5 }
  0x9b   :  { %v64_v7 = vpop.xlane.xlu0 %63 }
  0x9c   :  { %v67_v8 = vmul.f32 0.03125, %v64_v7  ;;  %v70_v9 = vmul.f32 %v68_v6, %v68_v6 }
  0x9e   :  { %v69_v10 = vsub.f32 %v2578_v1, %v67_v8  ;;  %v72_v11 = vsel %vm58_vm0, %v70_v9, 0.0 }
  0x9f   :  { %73 = vadd.xlane.f32.xlu1 %v72_v11 }
  0xa0   :  { %v71_v12 = vmul.f32 %v69_v10, %v69_v10 }
  0xa2   :  { %v75_v13 = vsel %vm58_vm0, %v71_v12, 0.0 }
  0xa3   :  { %76 = vadd.xlane.f32.xlu1 %v75_v13 }
 0x12c   :  { %v74_v20 = vpop.xlane.xlu1 %73 }
 0x12d   :  { %v78_v21 = vmul.f32 0.03125, %v74_v20 }
 0x12f   :  { %v80_v22 = vadd.f32 1e-05, %v78_v21 }
 0x130   :  { %v77_v23 = vpop.xlane.xlu1 %76 }
 0x131   :  { %2383 = vrsqrt.f32 %v80_v22  ;;  %v79_v24 = vmul.f32 0.03125, %v77_v23 }
 0x133   :  { %v81_v25 = vadd.f32 1e-05, %v79_v24 }
 0x135   :  { %2385 = vrsqrt.f32 %v81_v25 }
 0x13b   :  { %v2384_v26 = vpop.eup %2383 }
 0x13c   :  { %v84_v28 = vmul.f32 %v2384_v26, %v68_v6 }
 0x13e   :  { %v92_v30 = vmul.f32 %v1903_v27, %v84_v28 }
 0x13f   :  { %v2386_v31 = vpop.eup %2385 }
 0x140   :  { %v85_v32 = vmul.f32 %v2386_v31, %v69_v10  ;;  %v100_v33 = vadd.f32 %v1904_v29, %v92_v30 }
 0x142   :  { %v93_v34 = vmul.f32 %v1903_v27, %v85_v32  ;;  %2083 = vmatprep.mubr.msk.f32.mxu0 %vm58_vm0, %v100_v33 }
 0x144   :  { %v101_v35 = vadd.f32 %v1904_v29, %v93_v34 }
 0x146   :  { %2084 = vmatmul.mubr.msk.f32.vlgmr.msra.gmra.mrb[0].mxu0 %vm58_vm0, %v101_v35 }
 0x219   :  { %v2608_v36 = vpop.f32.mrb[0].mxu0 }
 0x21a   :  { %v2610_v37 = vpop.f32.mrb[1].mxu0 }
 0x21b   :  { %2090 = vmatprep.mubr.msk.f32.mxu1 %vm195_vm1, %v2610_v37  ;;  %v2616_v38 = vpack.i.bf16 %v2608_v36, %v2610_v37 }
 0x21d   :  { %2336 = vrot.lane.b32.xlu0 %v2616_v38, %s2463_s1 }
 0x221   :  { %2346 = vrot.lane.b32.xlu0 %v2616_v38, %s2464_s2 }
 0x225   :  { %393 = vrot.lane.b32.xlu0 %v2610_v37, %s2465_s22 }
 0x229   :  { %395 = vrot.lane.b32.xlu0 %v2608_v36, %s2465_s22 }
 0x28f   :  { %v2337_v39 = vpop.permute.xlu0 %2336 }
 0x290   :  { %v2339_v40 = vunpack.i.h.bf16 %v2337_v39  ;;  %v2338_v41 = vunpack.i.l.bf16 %v2337_v39 }
 0x292   :  { %v2177_v43 = vpack.c.bf16 %v2339_v40, %v2338_v41 }
 0x293   :  { %v2347_v4 = vpop.permute.xlu0 %2346 }
 0x294   :  { %2179 = vmatprep.subr.msk.bf16.mxu1 %vm2624_vm2, %v2177_v43  ;;  %v2349_v6 = vunpack.i.h.bf16 %v2347_v4  ;;  %v2348_v7 = vunpack.i.l.bf16 %v2347_v4 }
 0x295   :  { %2182 = vmatpush3.bf16.xpose.msk.msra.mxu1 %vm2624_vm2, %v2177_v43 }
 0x296   :  { %v2187_v11 = vpack.c.bf16 %v2349_v6, %v2348_v7 }
 0x297   :  { %v394_v16 = vpop.permute.xlu0 %393 }
 0x29b   :  { %v396_v17 = vpop.permute.xlu0 %395 }
 0x29c   :  { %2091 = vmatmul.mubr.msk.f32.vlgmr.msra.gmra.mrb[0].mxu1 %vm195_vm1, %v2608_v36 }
 0x36f   :  { %v2092_v44 = vpop.f32.mrb[0].mxu1 }
 0x370   :  { %v270_v45 = vpop.f32.mrb[1].mxu1  ;;  %v280_v47 = vmul.f32 0.35355338, %v2092_v44 }
 0x371   :  { %v279_v48 = vmul.f32 0.35355338, %v270_v45 }
 0x372   :  { %v282_v52 = vadd.f32 %v280_v47, %v2642_v49 }
 0x373   :  { %v281_v50 = vadd.f32 %v279_v48, %v2637_v46 }
 0x374   :  { %v287_v53 = vsel %vm283_vm3, %v282_v52, -inf }
 0x375   :  { %v284_v51 = vsel %vm283_vm3, %v281_v50, -inf }
 0x376   :  { %285 = vmax.xlane.f32.xlu1 %v284_v51 }
 0x37a   :  { %288 = vmax.xlane.f32.xlu1 %v287_v53 }
 0x403   :  { %v286_v54 = vpop.xlane.xlu1 %285 }
 0x404   :  { %v290_v55 = vsub.f32 %v281_v50, %v286_v54 }
 0x406   :  { %v292_v58 = vmul.f32 1.442695, %v290_v55 }
 0x407   :  { %v289_v56 = vpop.xlane.xlu1 %288 }
 0x408   :  { %v291_v57 = vsub.f32 %v282_v52, %v289_v56 }
 0x40a   :  { %v294_v59 = vmul.f32 1.442695, %v291_v57 }
 0x40c   :  { %2387 = vpow2.f32 %v294_v59 }
 0x40d   :  { %2389 = vpow2.f32 %v292_v58 }
 0x416   :  { %v2388_v60 = vpop.eup %2387 }
 0x417   :  { %v299_v61 = vsel %vm283_vm3, %v2388_v60, 0.0  ;;  %v2390_v62 = vpop.eup %2389 }
 0x418   :  { %300 = vadd.xlane.f32.xlu1 %v299_v61  ;;  %v296_v63 = vsel %vm283_vm3, %v2390_v62, 0.0 }
 0x41c   :  { %297 = vadd.xlane.f32.xlu1 %v296_v63 }
 0x42d   :  { %2341 = vrot.lane.b32.xlu1 %v2616_v38, %s2466_s6 }
 0x4a5   :  { %v301_v2 = vpop.xlane.xlu1 %300 }
 0x4a6   :  { %2391 = vrcp.f32 %v301_v2 }
 0x4a9   :  { %v298_v3 = vpop.xlane.xlu1 %297 }
 0x4aa   :  { %2393 = vrcp.f32 %v298_v3 }
 0x4ad   :  { %v2342_v5 = vpop.permute.xlu1 %2341 }
 0x4ae   :  { %v2344_v8 = vunpack.i.h.bf16 %v2342_v5  ;;  %v2343_v9 = vunpack.i.l.bf16 %v2342_v5 }
 0x4b0   :  { %v2183_v10 = vpack.c.bf16 %v2344_v8, %v2343_v9  ;;  %v2392_v12 = vpop.eup %2391 }
 0x4b1   :  { %v305_v15 = vmul.f32 %v2392_v12, %v2388_v60 }
 0x4b2   :  { %2184 = vmatprep.subr.bf16.mxu1 %v2183_v10 }
 0x4b3   :  { %2186 = vmatpush3.bf16.msra.mxu1 %v2183_v10 }
 0x4b4   :  { %v2394_v13 = vpop.eup %2393  ;;  %2189 = vmatprep.subr.msk.bf16.mxu1 %vm2624_vm2, %v2187_v11 }
 0x4b5   :  { %v303_v14 = vmul.f32 %v2394_v13, %v2390_v62 }
 0x4b7   :  { %2097 = vmatprep.mubr.msk.f32.mxu1 %vm283_vm3, %v303_v14 }
 0x4b8   :  { %2098 = vmatmul.mubr.msk.f32.vlgmr.msra.gmra.mrb[2].mxu1 %vm283_vm3, %v305_v15 }
 0x4b9   :  { %2104 = vmatprep.mubr.msk.f32.mxu1 %vm195_vm1, %v394_v16 }
 0x4bc   :  { %2192 = vmatpush3.bf16.xpose.msk.msra.mxu1 %vm2624_vm2, %v2187_v11 }
 0x4c3   :  { %2105 = vmatmul.mubr.msk.f32.vlgmr.msra.gmra.mrb[4].mxu1 %vm195_vm1, %v396_v17 }
 0x58b   :  { %v2659_v18 = vpop.f32.mrb[2].mxu1 }
 0x58c   :  { %v2661_v19 = vpop.f32.mrb[3].mxu1 }
 0x596   :  { %v2106_v20 = vpop.f32.mrb[4].mxu1 }
 0x597   :  { %v485_v21 = vmul.f32 0.35355338, %v2106_v20  ;;  %v475_v22 = vpop.f32.mrb[5].mxu1 }
 0x598   :  { %v484_v23 = vmul.f32 0.35355338, %v475_v22 }
 0x599   :  { %v487_v24 = vadd.f32 %v485_v21, %v2642_v49 }
 0x59a   :  { %v486_v25 = vadd.f32 %v484_v23, %v2637_v46 }
 0x59b   :  { %v491_v26 = vsel %vm283_vm3, %v487_v24, -inf }
 0x59c   :  { %492 = vmax.xlane.f32.xlu0 %v491_v26  ;;  %v488_v27 = vsel %vm283_vm3, %v486_v25, -inf }
 0x59d   :  { %489 = vmax.xlane.f32.xlu1 %v488_v27 }
 0x5ae   :  { %2351 = vrot.lane.b32.xlu1 %v2616_v38, %s2467_s27 }
 0x5b2   :  { %597 = vrot.lane.b32.xlu1 %v2610_v37, %s2468_s28 }
 0x5b6   :  { %599 = vrot.lane.b32.xlu1 %v2608_v36, %s2468_s28 }
 0x629   :  { %v493_v28 = vpop.xlane.xlu0 %492 }
 0x62a   :  { %v495_v29 = vsub.f32 %v487_v24, %v493_v28  ;;  %v490_v30 = vpop.xlane.xlu1 %489 }
 0x62b   :  { %v494_v31 = vsub.f32 %v486_v25, %v490_v30 }
 0x62c   :  { %v498_v32 = vmul.f32 1.442695, %v495_v29 }
 0x62d   :  { %v496_v33 = vmul.f32 1.442695, %v494_v31 }
 0x62e   :  { %2395 = vpow2.f32 %v498_v32  ;;  %v2352_v34 = vpop.permute.xlu1 %2351 }
 0x62f   :  { %v2354_v35 = vunpack.i.h.bf16 %v2352_v34  ;;  %v2353_v39 = vunpack.i.l.bf16 %v2352_v34  ;;  %2397 = vpow2.f32 %v496_v33 }
 0x631   :  { %v2193_v40 = vpack.c.bf16 %v2354_v35, %v2353_v39 }
 0x632   :  { %v598_v58 = vpop.permute.xlu1 %597 }
 0x633   :  { %2194 = vmatprep.subr.bf16.mxu0 %v2193_v40 }
 0x634   :  { %2196 = vmatpush3.bf16.msra.mxu0 %v2193_v40 }
 0x636   :  { %v600_v59 = vpop.permute.xlu1 %599 }
 0x638   :  { %v2396_v41 = vpop.eup %2395 }
 0x639   :  { %v503_v43 = vsel %vm283_vm3, %v2396_v41, 0.0  ;;  %v2398_v44 = vpop.eup %2397 }
 0x63a   :  { %504 = vadd.xlane.f32.xlu0 %v503_v43  ;;  %v500_v45 = vsel %vm283_vm3, %v2398_v44, 0.0 }
 0x63e   :  { %501 = vadd.xlane.f32.xlu0 %v500_v45 }
 0x654   :  { %2356 = vrot.lane.b32.xlu0 %v2616_v38, %s2469_s29 }
 0x6c7   :  { %v505_v47 = vpop.xlane.xlu0 %504 }
 0x6c8   :  { %2399 = vrcp.f32 %v505_v47 }
 0x6cb   :  { %v502_v48 = vpop.xlane.xlu0 %501 }
 0x6cc   :  { %2401 = vrcp.f32 %v502_v48 }
 0x6cf   :  { %v2357_v50 = vpop.permute.xlu0 %2356 }
 0x6d0   :  { %v2359_v51 = vunpack.i.h.bf16 %v2357_v50  ;;  %v2358_v52 = vunpack.i.l.bf16 %v2357_v50 }
 0x6d2   :  { %v2197_v53 = vpack.c.bf16 %v2359_v51, %v2358_v52  ;;  %v2400_v54 = vpop.eup %2399 }
 0x6d3   :  { %v509_v57 = vmul.f32 %v2400_v54, %v2396_v41 }
 0x6d4   :  { %2199 = vmatprep.subr.msk.bf16.mxu0 %vm2624_vm2, %v2197_v53 }
 0x6d6   :  { %v2402_v55 = vpop.eup %2401 }
 0x6d7   :  { %v507_v56 = vmul.f32 %v2402_v55, %v2398_v44 }
 0x6d9   :  { %2111 = vmatprep.mubr.msk.f32.mxu0 %vm283_vm3, %v507_v56 }
 0x6da   :  { %2112 = vmatmul.mubr.msk.f32.vlgmr.msra.gmra.mrb[2].mxu0 %vm283_vm3, %v509_v57 }
 0x6db   :  { %2202 = vmatpush3.bf16.xpose.msk.msra.mxu0 %vm2624_vm2, %v2197_v53  ;;  %2118 = vmatprep.mubr.msk.f32.mxu0 %vm195_vm1, %v598_v58 }
 0x6e2   :  { %2119 = vmatmul.mubr.msk.f32.vlgmr.msra.gmra.mrb[4].mxu0 %vm195_vm1, %v600_v59 }
 0x7ad   :  { %v2681_v60 = vpop.f32.mrb[2].mxu0 }
 0x7ae   :  { %v2683_v61 = vpop.f32.mrb[3].mxu0 }
 0x7b5   :  { %v2120_v62 = vpop.f32.mrb[4].mxu0 }
 0x7b6   :  { %v689_v63 = vmul.f32 0.35355338, %v2120_v62  ;;  %v679_v2 = vpop.f32.mrb[5].mxu0 }
 0x7b7   :  { %v688_v3 = vmul.f32 0.35355338, %v679_v2 }
 0x7b8   :  { %v691_v4 = vadd.f32 %v689_v63, %v2642_v49 }
 0x7b9   :  { %v690_v5 = vadd.f32 %v688_v3, %v2637_v46 }
 0x7ba   :  { %v695_v6 = vsel %vm283_vm3, %v691_v4, -inf }
 0x7bb   :  { %696 = vmax.xlane.f32.xlu0 %v695_v6  ;;  %v692_v7 = vsel %vm283_vm3, %v690_v5, -inf  ;;  %v1038_v6 = vld [vmem:[%s3101_s4 + $0x10] sm:$0xff] }
 0x7bc   :  { %693 = vmax.xlane.f32.xlu1 %v692_v7 }
 0x7cd   :  { %2361 = vrot.lane.b32.xlu1 %v2616_v38, %s2470_s30 }
 0x7d1   :  { %801 = vrot.lane.b32.xlu1 %v2610_v37, %s2471_s0 }
 0x7d5   :  { %803 = vrot.lane.b32.xlu1 %v2608_v36, %s2471_s0 }
 0x848   :  { %v697_v8 = vpop.xlane.xlu0 %696 }
 0x849   :  { %v699_v9 = vsub.f32 %v691_v4, %v697_v8  ;;  %v694_v10 = vpop.xlane.xlu1 %693  ;;  %v1039_v8 = vld [vmem:[%s3101_s4 + $0x18] sm:$0xff] }
 0x84a   :  { %v698_v11 = vsub.f32 %v690_v5, %v694_v10  ;;  %v1036_v5 = vld [vmem:[%s3101_s4] sm:$0xff] }
 0x84b   :  { %v702_v12 = vmul.f32 1.442695, %v699_v9  ;;  %v2221_v9 = vpack.c.bf16 %v1039_v8, %v1038_v6  ;;  %v1934_v8 = vld [vmem:[%s3104_s7] ss:$0 sm:$0xff] }
 0x84c   :  { %v700_v13 = vmul.f32 1.442695, %v698_v11 }
 0x84d   :  { %2403 = vpow2.f32 %v702_v12  ;;  %v2362_v14 = vpop.permute.xlu1 %2361 }
 0x84e   :  { %v2364_v15 = vunpack.i.h.bf16 %v2362_v14  ;;  %v2363_v16 = vunpack.i.l.bf16 %v2362_v14  ;;  %2405 = vpow2.f32 %v700_v13 }
 0x850   :  { %v2203_v17 = vpack.c.bf16 %v2364_v15, %v2363_v16 }
 0x851   :  { %v802_v32 = vpop.permute.xlu1 %801 }
 0x852   :  { %2204 = vmatprep.subr.bf16.mxu1 %v2203_v17 }
 0x853   :  { %2206 = vmatpush3.bf16.msra.mxu1 %v2203_v17 }
 0x855   :  { %v804_v33 = vpop.permute.xlu1 %803 }
 0x857   :  { %v2404_v20 = vpop.eup %2403 }
 0x858   :  { %v707_v21 = vsel %vm283_vm3, %v2404_v20, 0.0  ;;  %v2406_v37 = vpop.eup %2405 }
 0x859   :  { %708 = vadd.xlane.f32.xlu0 %v707_v21  ;;  %v704_v36 = vsel %vm283_vm3, %v2406_v37, 0.0 }
 0x85d   :  { %705 = vadd.xlane.f32.xlu0 %v704_v36 }
 0x873   :  { %2366 = vrot.lane.b32.xlu0 %v2616_v38, %s2472_s17 }
 0x8e6   :  { %v709_v22 = vpop.xlane.xlu0 %708 }
 0x8e7   :  { %2407 = vrcp.f32 %v709_v22 }
 0x8ea   :  { %v706_v23 = vpop.xlane.xlu0 %705 }
 0x8eb   :  { %2409 = vrcp.f32 %v706_v23 }
 0x8ee   :  { %v2367_v24 = vpop.permute.xlu0 %2366 }
 0x8ef   :  { %v2369_v25 = vunpack.i.h.bf16 %v2367_v24  ;;  %v2368_v26 = vunpack.i.l.bf16 %v2367_v24 }
 0x8f1   :  { %v2207_v27 = vpack.c.bf16 %v2369_v25, %v2368_v26  ;;  %v2408_v28 = vpop.eup %2407 }
 0x8f2   :  { %v713_v31 = vmul.f32 %v2408_v28, %v2404_v20 }
 0x8f3   :  { %2209 = vmatprep.subr.msk.bf16.mxu1 %vm2624_vm2, %v2207_v27 }
 0x8f5   :  { %v2410_v29 = vpop.eup %2409 }
 0x8f6   :  { %v711_v30 = vmul.f32 %v2410_v29, %v2406_v37 }
 0x8f8   :  { %2125 = vmatprep.mubr.msk.f32.mxu1 %vm283_vm3, %v711_v30 }
 0x8f9   :  { %2126 = vmatmul.mubr.msk.f32.vlgmr.msra.gmra.mrb[6].mxu1 %vm283_vm3, %v713_v31 }
 0x8fa   :  { %2212 = vmatpush3.bf16.xpose.msk.msra.mxu1 %vm2624_vm2, %v2207_v27  ;;  %2132 = vmatprep.mubr.msk.f32.mxu1 %vm195_vm1, %v802_v32 }
 0x901   :  { %2133 = vmatmul.mubr.msk.f32.vlgmr.msra.gmra.mrb[8].mxu1 %vm195_vm1, %v804_v33 }
 0x9cc   :  { %v2127_v34 = vpop.f32.mrb[6].mxu1 }
 0x9cd   :  { %v792_v35 = vpop.f32.mrb[7].mxu1 }
 0x9d4   :  { %v2134_v39 = vpop.f32.mrb[8].mxu1 }
 0x9d5   :  { %v893_v40 = vmul.f32 0.35355338, %v2134_v39  ;;  %v883_v41 = vpop.f32.mrb[9].mxu1 }
 0x9d6   :  { %v892_v43 = vmul.f32 0.35355338, %v883_v41 }
 0x9d7   :  { %v895_v44 = vadd.f32 %v893_v40, %v2642_v49 }
 0x9d8   :  { %v894_v45 = vadd.f32 %v892_v43, %v2637_v46  ;;  %v1344_v43 = vld [vmem:[%s3109_s12 + $0x8] sm:$0xff] }
 0x9d9   :  { %v899_v47 = vsel %vm283_vm3, %v895_v44, -inf }
 0x9da   :  { %900 = vmax.xlane.f32.xlu0 %v899_v47  ;;  %v896_v42 = vsel %vm283_vm3, %v894_v45, -inf  ;;  %v1343_v47 = vld [vmem:[%s3109_s12] sm:$0xff] }
 0x9db   :  { %897 = vmax.xlane.f32.xlu1 %v896_v42  ;;  %v1347_v42 = vld [vmem:[%s3109_s12 + $0x20] sm:$0xff] }
 0x9ec   :  { %2371 = vrot.lane.b32.xlu1 %v2616_v38, %s2473_s18 }
 0x9f0   :  { %1009 = vrot.lane.b32.xlu1 %v2681_v60, %s2474_s19 }
 0x9f4   :  { %1015 = vrot.lane.b32.xlu1 %v792_v35, %s2475_s20 }
 0x9f8   :  { %1017 = vrot.lane.b32.xlu1 %v2127_v34, %s2475_s20 }
 0xa67   :  { %v901_v48 = vpop.xlane.xlu0 %900 }
 0xa68   :  { %v903_v49 = vsub.f32 %v895_v44, %v901_v48  ;;  %v898_v50 = vpop.xlane.xlu1 %897  ;;  %v1348_v44 = vld [vmem:[%s3109_s12 + $0x28] sm:$0xff]  ;;  %v2235_v48 = vpack.c.bf16 %v1347_v42, %v1343_v47 }
 0xa69   :  { %v902_v46 = vsub.f32 %v894_v45, %v898_v50  ;;  %v2233_v45 = vpack.c.bf16 %v1348_v44, %v1344_v43  ;;  %v1177_v50 = vld [vmem:[%s3106_s9 + $0x8] sm:$0xff] }
 0xa6a   :  { %v906_v51 = vmul.f32 1.442695, %v903_v49  ;;  %v1176_v49 = vld [vmem:[%s3106_s9] sm:$0xff] }
 0xa6b   :  { %v904_v52 = vmul.f32 1.442695, %v902_v46  ;;  %v2225_v46 = vpack.c.bf16 %v1177_v50, %v1176_v49 }
 0xa6c   :  { %v2372_v53 = vpop.permute.xlu1 %2371 }
 0xa6d   :  { %2411 = vpow2.f32 %v904_v52  ;;  %v2374_v54 = vunpack.i.h.bf16 %v2372_v53  ;;  %v2373_v55 = vunpack.i.l.bf16 %v2372_v53  ;;  %v1356_v52 = vld [vmem:[%s3109_s12 + $0x68] sm:$0xff]  ;;  %2226 = vmatprep.subr.bf16.mxu1 %v2225_v46 }
 0xa6e   :  { %2413 = vpow2.f32 %v906_v51  ;;  %v1352_v51 = vld [vmem:[%s3109_s12 + $0x48] sm:$0xff]  ;;  %2228 = vmatpush3.bf16.msra.mxu1 %v2225_v46 }
 0xa6f   :  { %v2213_v56 = vpack.c.bf16 %v2374_v54, %v2373_v55  ;;  %v2237_v53 = vpack.c.bf16 %v1356_v52, %v1352_v51  ;;  %v1351_v54 = vld [vmem:[%s3109_s12 + $0x40] sm:$0xff] }
 0xa70   :  { %v1010_v12 = vpop.permute.xlu1 %1009  ;;  %v1355_v55 = vld [vmem:[%s3109_s12 + $0x60] sm:$0xff] }
 0xa71   :  { %2214 = vmatprep.subr.bf16.mxu0 %v2213_v56  ;;  %v1030_v20 = vsel %vm195_vm1, %v2659_v18, %v1010_v12 }
 0xa72   :  { %2216 = vmatpush3.bf16.msra.mxu0 %v2213_v56  ;;  %v2239_v56 = vpack.c.bf16 %v1355_v55, %v1351_v54 }
 0xa74   :  { %v1016_v13 = vpop.permute.xlu1 %1015 }
 0xa77   :  { %v2412_v38 = vpop.eup %2411 }
 0xa78   :  { %v908_v57 = vsel %vm283_vm3, %v2412_v38, 0.0  ;;  %v2414_v58 = vpop.eup %2413  ;;  %v1018_v15 = vpop.permute.xlu1 %1017 }
 0xa79   :  { %909 = vadd.xlane.f32.xlu0 %v908_v57  ;;  %v911_v59 = vsel %vm283_vm3, %v2414_v58, 0.0  ;;  %v1032_v36 = vsel %vm283_vm3, %v1030_v20, %v1018_v15  ;;  %v1179_v57 = vld [vmem:[%s3106_s9 + $0x18] sm:$0xff]  ;;  %v1345_v15 = vld [vmem:[%s3109_s12 + $0x10] sm:$0xff] }
 0xa7a   :  { %v1358_v20 = vld [vmem:[%s3109_s12 + $0x78] sm:$0xff] }
 0xa7d   :  { %912 = vadd.xlane.f32.xlu0 %v911_v59  ;;  %v2477_v59 = vmov 0.0  }
 0xa93   :  { %1007 = vrot.lane.b32.xlu0 %v2683_v61, %s2474_s19  ;;  %v1037_v61 = vld [vmem:[%s3101_s4 + $0x8] sm:$0xff] }
 0xa94   :  { %v2217_v7 = vpack.c.bf16 %v1037_v61, %v1036_v5 }
 0xa96   :  { %2218 = vmatprep.subr.bf16.mxu0 %v2217_v7 }
 0xb06   :  { %v910_v60 = vpop.xlane.xlu0 %909 }
 0xb07   :  { %2415 = vrcp.f32 %v910_v60  ;;  %v1346_v60 = vld [vmem:[%s3109_s12 + $0x18] sm:$0xff] }
 0xb0a   :  { %v913_v62 = vpop.xlane.xlu0 %912 }
 0xb0b   :  { %2417 = vrcp.f32 %v913_v62  ;;  %v1350_v62 = vld [vmem:[%s3109_s12 + $0x38] sm:$0xff] }
 0xb0e   :  { %v1008_v14 = vpop.permute.xlu0 %1007 }
 0xb0f   :  { %v1029_v16 = vsel %vm195_vm1, %v2661_v19, %v1008_v14  ;;  %v1933_v19 = vld [vmem:[%s3102_s5] ss:$0 sm:$0xff] }
 0xb10   :  { %v1031_v21 = vsel %vm283_vm3, %v1029_v16, %v1016_v13  ;;  %v1349_v16 = vld [vmem:[%s3109_s12 + $0x30] sm:$0xff] }
 0xb11   :  { %v2416_v63 = vpop.eup %2415 }
 0xb12   :  { %v915_v2 = vmul.f32 %v2416_v63, %v2412_v38  ;;  %v1178_v38 = vld [vmem:[%s3106_s9 + $0x10] sm:$0xff]  ;;  %v2241_v63 = vpack.c.bf16 %v1350_v62, %v1346_v60 }
 0xb14   :  { %2139 = vmatprep.mubr.msk.f32.mxu0 %vm283_vm3, %v915_v2 }
 0xb15   :  { %v2418_v3 = vpop.eup %2417 }
 0xb16   :  { %v917_v4 = vmul.f32 %v2418_v3, %v2414_v58  ;;  %v2229_v58 = vpack.c.bf16 %v1179_v57, %v1178_v38  ;;  %v1287_v57 = vld [vmem:[%s3108_s11 + $0x8] sm:$0xff] }
 0xb18   :  { %2140 = vmatmul.mubr.msk.f32.vlgmr.msra.gmra.mrb[6].mxu0 %vm283_vm3, %v917_v4  ;;  %2230 = vmatprep.subr.bf16.mxu1 %v2229_v58 }
 0xb19   :  { %2220 = vmatpush3.bf16.msra.mxu0 %v2217_v7  ;;  %2232 = vmatpush3.bf16.msra.mxu1 %v2229_v58  ;;  %v1286_v58 = vld [vmem:[%s3108_s11] sm:$0xff] }
 0xb1a   :  { %2222 = vmatprep.subr.bf16.mxu0 %v2221_v9  ;;  %2242 = vmatprep.subr.bf16.mxu1 %v2241_v63 }
 0xb1d   :  { %2224 = vmatpush3.bf16.msra.mxu0 %v2221_v9 }
 0xb1e   :  { %2234 = vmatprep.subr.bf16.mxu0 %v2233_v45 }
 0xbeb   :  { %v2141_v10 = vpop.f32.mrb[6].mxu0 }
 0xbec   :  { %1025 = vrot.lane.b32.xlu1 %v2141_v10, %s2476_s26  ;;  %v996_v11 = vpop.f32.mrb[7].mxu0  ;;  %v1935_v10 = vld [vmem:[%s3105_s8] ss:$0 sm:$0xff] }
 0xbed   :  { %1023 = vrot.lane.b32.xlu0 %v996_v11, %s2476_s26 }
 0xc5e   :  { %v1026_v17 = vpop.permute.xlu1 %1025 }
 0xc5f   :  { %v1024_v37 = vpop.permute.xlu0 %1023  ;;  %v1035_v23 = vsel %vm1033_vm4, %v1032_v36, %v1026_v17  ;;  %v1354_v17 = vld [vmem:[%s3109_s12 + $0x58] sm:$0xff] }
 0xc60   :  { %v1034_v22 = vsel %vm1033_vm4, %v1031_v21, %v1024_v37  ;;  %v2243_v37 = vpack.c.bf16 %v1349_v16, %v1345_v15 }
 0xc61   :  { %2150 = vmatprep.mubr.msk.f32.mxu0 %vm58_vm0, %v1034_v22  ;;  %v2245_v22 = vpack.c.bf16 %v1358_v20, %v1354_v17 }
 0xc62   :  { %2151 = vmatmul.mubr.msk.f32.vlgmr.msra.gmra.mrb[8].mxu0 %vm58_vm0, %v1035_v23  ;;  %v1353_v23 = vld [vmem:[%s3109_s12 + $0x50] sm:$0xff] }
 0xc63   :  { %2236 = vmatpush1.bf16.msra.mxu0 %v2235_v48  ;;  %1445 = vmatprep.mubr.f32.mxu0 %v2477_v59 }
 0xc64   :  { %2238 = vmatprep.subr.bf16.mxu0 %v2237_v53 }
 0xc67   :  { %2240 = vmatpush1.bf16.msra.mxu0 %v2239_v56 }
 0xd35   :  { %v2152_v24 = vpop.f32.mrb[8].mxu0 }
 0xd36   :  { %v1122_v25 = vadd.f32 %v2152_v24, %v2578_v1  ;;  %v1112_v26 = vpop.f32.mrb[9].mxu0  ;;  %v1357_v24 = vld [vmem:[%s3109_s12 + $0x70] sm:$0xff] }
 0xd37   :  { %v1121_v18 = vadd.f32 %v1112_v26, %v2573_v0 }
 0xd38   :  { %v2741_v27 = vadd.f32 %v1933_v19, %v1122_v25 }
 0xd39   :  { %v2743_v28 = vadd.f32 %v1933_v19, %v1121_v18  ;;  %v2247_v19 = vpack.c.bf16 %v1357_v24, %v1353_v23  ;;  %v1936_v18 = vld [vmem:[%s3107_s10] ss:$0 sm:$0xff]  ;;  %s2478_s10 = smov 124  }
 0xd3a   :  { %v1137_v29 = vsel %vm58_vm0, %v2741_v27, 0.0 }
 0xd3b   :  { %1138 = vadd.xlane.f32.xlu1 %v1137_v29  ;;  %v1134_v30 = vsel %vm58_vm0, %v2743_v28, 0.0 }
 0xd3c   :  { %1135 = vadd.xlane.f32.xlu0 %v1134_v30 }
 0xdc8   :  { %v1139_v31 = vpop.xlane.xlu1 %1138 }
 0xdc9   :  { %v1141_v32 = vmul.f32 0.03125, %v1139_v31  ;;  %v1136_v33 = vpop.xlane.xlu0 %1135 }
 0xdca   :  { %v1140_v34 = vmul.f32 0.03125, %v1136_v33 }
 0xdcb   :  { %v1143_v1 = vsub.f32 %v2741_v27, %v1141_v32 }
 0xdcc   :  { %v1142_v0 = vsub.f32 %v2743_v28, %v1140_v34 }
 0xdcd   :  { %v1145_v40 = vmul.f32 %v1143_v1, %v1143_v1 }
 0xdce   :  { %v1144_v35 = vmul.f32 %v1142_v0, %v1142_v0 }
 0xdcf   :  { %v1149_v41 = vsel %vm58_vm0, %v1145_v40, 0.0 }
 0xdd0   :  { %v1146_v39 = vsel %vm58_vm0, %v1144_v35, 0.0 }
 0xdd1   :  { %1147 = vadd.xlane.f32.xlu0 %v1146_v39 }
 0xdd5   :  { %1150 = vadd.xlane.f32.xlu0 %v1149_v41 }
 0xe5e   :  { %v1148_v2 = vpop.xlane.xlu0 %1147 }
 0xe5f   :  { %v1152_v3 = vmul.f32 0.03125, %v1148_v2 }
 0xe61   :  { %v1154_v4 = vadd.f32 1e-05, %v1152_v3 }
 0xe62   :  { %v1151_v5 = vpop.xlane.xlu0 %1150 }
 0xe63   :  { %2419 = vrsqrt.f32 %v1154_v4  ;;  %v1153_v61 = vmul.f32 0.03125, %v1151_v5 }
 0xe65   :  { %v1155_v6 = vadd.f32 1e-05, %v1153_v61 }
 0xe67   :  { %2421 = vrsqrt.f32 %v1155_v6 }
 0xe6d   :  { %v2420_v7 = vpop.eup %2419 }
 0xe6e   :  { %v1158_v9 = vmul.f32 %v2420_v7, %v1142_v0 }
 0xe70   :  { %v1166_v11 = vmul.f32 %v1934_v8, %v1158_v9 }
 0xe71   :  { %v2422_v12 = vpop.eup %2421 }
 0xe72   :  { %v1159_v13 = vmul.f32 %v2422_v12, %v1143_v1  ;;  %v1174_v14 = vadd.f32 %v1935_v10, %v1166_v11 }
 0xe74   :  { %v1167_v21 = vmul.f32 %v1934_v8, %v1159_v13  ;;  %2161 = vmatprep.mubr.msk.f32.mxu1 %vm58_vm0, %v1174_v14  ;;  %1939 = vmatmul.mubr.msk.f32.vlgmr.msra.gmra.mrb[10].mxu0 %vm58_vm0, %v1174_v14 }
 0xe75   :  { %1451 = vmatprep.mubr.f32.mxu0 %v2477_v59 }
 0xe76   :  { %v1175_v36 = vadd.f32 %v1935_v10, %v1167_v21 }
 0xe78   :  { %2162 = vmatmul.mubr.msk.f32.vlgmr.msra.gmra.mrb[10].mxu1 %vm58_vm0, %v1175_v36  ;;  %1940 = vmatmul.mubr.msk.f32.gmra.mrb[12].mxu0 %vm58_vm0, %v1175_v36 }
 0xe79   :  { %2244 = vmatpush1.bf16.msra.mxu1 %v2243_v37  ;;  %1522 = vmatprep.mubr.f32.mxu1 %v2477_v59 }
 0xe7a   :  { %2246 = vmatprep.subr.bf16.mxu1 %v2245_v22 }
 0xe7d   :  { %2248 = vmatpush1.bf16.msra.mxu1 %v2247_v19 }
 0xe80   :  { %1941 = vmatmul.mubr.msk.f32.vlgmr.msra.gmra.mrb[12].mxu1 %vm58_vm0, %v1174_v14 }
 0xe81   :  { %1528 = vmatprep.mubr.f32.mxu1 %v2477_v59 }
 0xe84   :  { %1942 = vmatmul.mubr.msk.f32.gmra.mrb[14].mxu1 %vm58_vm0, %v1175_v36 }
 0xf47   :  { %v2825_v25 = vpop.f32.mrb[10].mxu0 }
 0xf48   :  { %v2827_v26 = vpop.f32.mrb[11].mxu0 }
 0xf4b   :  { %v2163_v29 = vpop.f32.mrb[10].mxu1  ;;  %v2832_v30 = vpop.f32.mrb[12].mxu0 }
 0xf4c   :  { %v1265_v31 = vadd.f32 %v2163_v29, %v1936_v18  ;;  %v1259_v32 = vpop.f32.mrb[11].mxu1  ;;  %v2834_v33 = vpop.f32.mrb[13].mxu0  ;;  %v1649_v29 = vld [vmem:[%s3112_s15] sm:$0xf] }
 0xf4d   :  { %v1260_v34 = vadd.f32 %v1936_v18, %v1259_v32  ;;  %2164 = vmatprep.subr.msk.mxu0 %vm1654_vm10, %v1649_v29  ;;  %v1601_v32 = vld [vmem:[%s3111_s14 + $0x80] sm:$0xff] }
 0xf4e   :  { %v1271_v1 = vand.u32 2147483647, %v1265_v31  ;;  %v1269_v52 = vmax.f32 %v1265_v31, 0.0  ;;  %2165 = vmatpush3.msk.msra.mxu0 %vm1654_vm10, %v1649_v29  ;;  %v1612_v29 = vld [vmem:[%s3111_s14 + $0xd8] sm:$0xff] }
 0xf4f   :  { %v1270_v0 = vand.u32 2147483647, %v1260_v34  ;;  %v1268_v54 = vmax.f32 %v1260_v34, 0.0 }
 0xf50   :  { %v1273_v35 = vsub.f32 0.0, %v1271_v1  ;;  %v1585_v1 = vld [vmem:[%s3111_s14] sm:$0xff] }
 0xf51   :  { %v1272_v39 = vsub.f32 0.0, %v1270_v0 }
 0xf52   :  { %v1276_v40 = vmul.f32 1.442695, %v1273_v35  ;;  %v1586_v35 = vld [vmem:[%s3111_s14 + $0x8] sm:$0xff] }
 0xf53   :  { %v1274_v41 = vmul.f32 1.442695, %v1272_v39  ;;  %v2836_v43 = vpop.f32.mrb[12].mxu1  ;;  %v1603_v39 = vld [vmem:[%s3111_s14 + $0x90] sm:$0xff] }
 0xf54   :  { %2423 = vpow2.f32 %v1276_v40  ;;  %v2838_v44 = vpop.f32.mrb[13].mxu1  ;;  %v1604_v40 = vld [vmem:[%s3111_s14 + $0x98] sm:$0xff] }
 0xf55   :  { %2425 = vpow2.f32 %v1274_v41  ;;  %v2251_v41 = vpack.c.bf16 %v1586_v35, %v1585_v1  ;;  %v1596_v35 = vld [vmem:[%s3111_s14 + $0x58] sm:$0xff] }
 0xf57   :  { %v2840_v45 = vpop.f32.mrb[14].mxu1 }
 0xf58   :  { %v2842_v47 = vpop.f32.mrb[15].mxu1 }
 0xf5e   :  { %v2424_v42 = vpop.eup %2423 }
 0xf5f   :  { %v2426_v48 = vpop.eup %2425  ;;  %v1279_v49 = vadd.f32 1.0, %v2424_v42  ;;  %v2253_v42 = vpack.c.bf16 %v1604_v40, %v1603_v39  ;;  %v1639_v40 = vld [vmem:[%s3111_s14 + $0x1b0] sm:$0xff] }
 0xf60   :  { %v1278_v50 = vadd.f32 1.0, %v2426_v48  ;;  %v1587_v48 = vld [vmem:[%s3111_s14 + $0x10] sm:$0xff] }
 0xf61   :  { %2427 = vlog2.f32 %v1279_v49  ;;  %v1588_v49 = vld [vmem:[%s3111_s14 + $0x18] sm:$0xff] }
 0xf62   :  { %2429 = vlog2.f32 %v1278_v50  ;;  %v1605_v50 = vld [vmem:[%s3111_s14 + $0xa0] sm:$0xff] }
 0xf6b   :  { %v2428_v46 = vpop.eup %2427 }
 0xf6c   :  { %v2430_v51 = vpop.eup %2429  ;;  %v1283_v53 = vmul.f32 0.6931472, %v2428_v46  ;;  %v1606_v46 = vld [vmem:[%s3111_s14 + $0xa8] sm:$0xff] }
 0xf6d   :  { %v1281_v55 = vmul.f32 0.6931472, %v2430_v51  ;;  %v2255_v51 = vpack.c.bf16 %v1588_v49, %v1587_v48  ;;  %v1613_v48 = vld [vmem:[%s3111_s14 + $0xe0] sm:$0xff]  ;;  %v1614_v49 = vld [vmem:[%s3111_s14 + $0xe8] sm:$0xff] }
 0xf6e   :  { %v1285_v56 = vadd.f32 %v1283_v53, %v1269_v52  ;;  %v1633_v52 = vld [vmem:[%s3111_s14 + $0x180] sm:$0xff]  ;;  %v1634_v53 = vld [vmem:[%s3111_s14 + $0x188] sm:$0xff] }
 0xf6f   :  { %v1284_v38 = vadd.f32 %v1281_v55, %v1268_v54  ;;  %v2257_v54 = vpack.c.bf16 %v1606_v46, %v1605_v50  ;;  %v1589_v55 = vld [vmem:[%s3111_s14 + $0x20] sm:$0xff]  ;;  %v1623_v46 = vld [vmem:[%s3111_s14 + $0x130] sm:$0xff] }
 0xf70   :  { %1292 = vrot.lane.b32.xlu1 %v1285_v56, %s2478_s10  ;;  %v1590_v56 = vld [vmem:[%s3111_s14 + $0x28] sm:$0xff] }
 0xf71   :  { %1290 = vrot.lane.b32.xlu0 %v1284_v38, %s2478_s10  ;;  %v2281_v38 = vpack.c.bf16 %v1634_v53, %v1633_v52  ;;  %v1624_v53 = vld [vmem:[%s3111_s14 + $0x138] sm:$0xff] }
 0xf73   :  { %2282 = vmatprep.subr.bf16.mxu0 %v2281_v38  ;;  %v1641_v38 = vld [vmem:[%s3111_s14 + $0x1c0] sm:$0xff] }
 0xfe2   :  { %v1293_v59 = vpop.permute.xlu1 %1292 }
 0xfe3   :  { %v1297_v60 = vmul.f32 %v1293_v59, %v1287_v57  ;;  %v1291_v62 = vpop.permute.xlu0 %1290  ;;  %v1607_v57 = vld [vmem:[%s3111_s14 + $0xb0] sm:$0xff]  ;;  %v2259_v59 = vpack.c.bf16 %v1590_v56, %v1589_v55  ;;  %v1598_v55 = vld [vmem:[%s3111_s14 + $0x68] sm:$0xff] }
 0xfe4   :  { %v1296_v63 = vmul.f32 %v1291_v62, %v1286_v58  ;;  %v1608_v58 = vld [vmem:[%s3111_s14 + $0xb8] sm:$0xff]  ;;  %v1591_v62 = vld [vmem:[%s3111_s14 + $0x30] sm:$0xff] }
 0xfe5   :  { %v1299_v2 = vadd.f32 %v1297_v60, %v1265_v31  ;;  %v2479_v31 = vmov 1   ;;  %v2261_v60 = vpack.c.bf16 %v1608_v58, %v1607_v57  ;;  %v1642_v57 = vld [vmem:[%s3111_s14 + $0x1c8] sm:$0xff]  ;;  %v1615_v58 = vld [vmem:[%s3111_s14 + $0xf0] sm:$0xff] }
 0xfe6   :  { %v1298_v3 = vadd.f32 %v1296_v63, %v1260_v34  ;;  %2376 = vset.pattern.permute.xlu1 %v2479_v31  ;;  %2375 = vset.pattern.permute.xlu0 %v2479_v31  ;;  %v1602_v34 = vld [vmem:[%s3111_s14 + $0x88] sm:$0xff]  ;;  %v1592_v63 = vld [vmem:[%s3111_s14 + $0x38] sm:$0xff]  ;;  %v2480_v31 = vmov 0  }
 0xfe7   :  { %v1304_v4 = vsel %vm1300_vm5, %v1299_v2, -inf  ;;  %v2249_v0 = vpack.c.bf16 %v1602_v34, %v1601_v32  ;;  %v1622_v34 = vld [vmem:[%s3111_s14 + $0x128] sm:$0xff] }
 0xfe8   :  { %1305 = vmax.xlane.f32.xlu0 %v1304_v4  ;;  %v1301_v5 = vsel %vm1300_vm5, %v1298_v3, -inf }
 0xfe9   :  { %1302 = vmax.xlane.f32.xlu1 %v1301_v5  ;;  %2250 = vmatprep.subr.bf16.mxu1 %v2249_v0  ;;  %v1617_v5 = vld [vmem:[%s3111_s14 + $0x100] sm:$0xff]  ;;  %v1595_v0 = vld [vmem:[%s3111_s14 + $0x50] sm:$0xff] }
 0xfea   :  { %2252 = vmatpush3.bf16.msra.mxu1 %v2251_v41  ;;  %v2271_v39 = vpack.c.bf16 %v1596_v35, %v1595_v0  ;;  %v1640_v41 = vld [vmem:[%s3111_s14 + $0x1b8] sm:$0xff] }
 0xfeb   :  { %2254 = vmatprep.subr.bf16.mxu1 %v2253_v42  ;;  %v2481_v42 = vmov 3   ;;  %v2293_v52 = vpack.c.bf16 %v1640_v41, %v1639_v40 }
 0xfee   :  { %2256 = vmatpush3.bf16.msra.mxu1 %v2255_v51  ;;  %v2273_v51 = vpack.c.bf16 %v1614_v49, %v1613_v48 }
 0xfef   :  { %2258 = vmatprep.subr.bf16.mxu1 %v2257_v54  ;;  %v1597_v54 = vld [vmem:[%s3111_s14 + $0x60] sm:$0xff] }
 0xff0   :  { %v2275_v56 = vpack.c.bf16 %v1598_v55, %v1597_v54 }
 0xff2   :  { %2260 = vmatpush3.bf16.msra.mxu1 %v2259_v59  ;;  %v2295_v59 = vpack.c.bf16 %v1624_v53, %v1623_v46 }
 0xff3   :  { %2262 = vmatprep.subr.bf16.mxu1 %v2261_v60  ;;  %v1616_v60 = vld [vmem:[%s3111_s14 + $0xf8] sm:$0xff] }
0x1075   :  { %v1306_v61 = vpop.xlane.xlu0 %1305 }
0x1076   :  { %vm1308_vm6 = vcmp.ge.f32.partialorder %v1299_v2, %v1306_v61  ;;  %v1303_v6 = vpop.xlane.xlu1 %1302  ;;  %v1618_v61 = vld [vmem:[%s3111_s14 + $0x108] sm:$0xff] }
0x1077   :  { %vm1307_vm7 = vcmp.ge.f32.partialorder %v1298_v3, %v1303_v6  ;;  %v1310_v7 = vsel %vm1308_vm6, -1e+30, %v1299_v2 }
0x1078   :  { %v1314_v8 = vsel %vm1300_vm5, %v1310_v7, -inf  ;;  %v1309_v9 = vsel %vm1307_vm7, -1e+30, %v1298_v3  ;;  %v1635_v7 = vld [vmem:[%s3111_s14 + $0x190] sm:$0xff] }
0x1079   :  { %1315 = vmax.xlane.f32.xlu1 %v1314_v8  ;;  %v1311_v10 = vsel %vm1300_vm5, %v1309_v9, -inf  ;;  %v1636_v8 = vld [vmem:[%s3111_s14 + $0x198] sm:$0xff] }
0x107a   :  { %1312 = vmax.xlane.f32.xlu0 %v1311_v10 }
0x1106   :  { %v1316_v11 = vpop.xlane.xlu1 %1315 }
0x1107   :  { %vm1318_vm8 = vcmp.ge.f32.partialorder %v1299_v2, %v1316_v11  ;;  %v1313_v12 = vpop.xlane.xlu0 %1312 }
0x1108   :  { %vm1317_vm9 = vcmp.ge.f32.partialorder %v1298_v3, %v1313_v12  ;;  %v1320_v13 = vsel %vm1318_vm8, %v1299_v2, -1e+30  ;;  %v2263_v2 = vpack.c.bf16 %v1592_v63, %v1591_v62  ;;  %v2283_v12 = vpack.c.bf16 %v1618_v61, %v1617_v5  ;;  %v1599_v62 = vld [vmem:[%s3111_s14 + $0x70] sm:$0xff]  ;;  %v1600_v63 = vld [vmem:[%s3111_s14 + $0x78] sm:$0xff] }
0x1109   :  { %v1324_v14 = vsel %vm1300_vm5, %v1320_v13, -inf  ;;  %v1319_v15 = vsel %vm1317_vm9, %v1298_v3, -1e+30  ;;  %v2277_v5 = vpack.c.bf16 %v1616_v60, %v1615_v58  ;;  %v2279_v61 = vpack.c.bf16 %v1600_v63, %v1599_v62 }
0x110a   :  { %1325 = vmax.xlane.f32.xlu1 %v1324_v14  ;;  %v1321_v16 = vsel %vm1300_vm5, %v1319_v15, -inf  ;;  %2264 = vmatpush3.bf16.msra.mxu1 %v2263_v2  ;;  %v1609_v14 = vld [vmem:[%s3111_s14 + $0xc0] sm:$0xff]  ;;  %v2297_v2 = vpack.c.bf16 %v1642_v57, %v1641_v38 }
0x110b   :  { %1322 = vmax.xlane.f32.xlu0 %v1321_v16  ;;  %v2285_v16 = vpack.c.bf16 %v1636_v8, %v1635_v7  ;;  %v1644_v7 = vld [vmem:[%s3111_s14 + $0x1d8] sm:$0xff] }
0x1197   :  { %v1326_v17 = vpop.xlane.xlu1 %1325 }
0x1198   :  { %v1328_v20 = vsub.f32 %v1320_v13, %v1326_v17  ;;  %v1323_v21 = vpop.xlane.xlu0 %1322  ;;  %v1619_v13 = vld [vmem:[%s3111_s14 + $0x110] sm:$0xff]  ;;  %v1620_v17 = vld [vmem:[%s3111_s14 + $0x118] sm:$0xff] }
0x1199   :  { %v1327_v37 = vsub.f32 %v1319_v15, %v1323_v21  ;;  %v1610_v15 = vld [vmem:[%s3111_s14 + $0xc8] sm:$0xff]  ;;  %v1593_v21 = vld [vmem:[%s3111_s14 + $0x40] sm:$0xff] }
0x119a   :  { %v1331_v36 = vmul.f32 1.442695, %v1328_v20  ;;  %v2265_v20 = vpack.c.bf16 %v1610_v15, %v1609_v14  ;;  %v1645_v14 = vld [vmem:[%s3111_s14 + $0x1e0] sm:$0xff]  ;;  %v1646_v15 = vld [vmem:[%s3111_s14 + $0x1e8] sm:$0xff] }
0x119b   :  { %v1329_v22 = vmul.f32 1.442695, %v1327_v37  ;;  %v1594_v37 = vld [vmem:[%s3111_s14 + $0x48] sm:$0xff] }
0x119c   :  { %2431 = vpow2.f32 %v1331_v36  ;;  %v2267_v36 = vpack.c.bf16 %v1594_v37, %v1593_v21  ;;  %2266 = vmatprep.subr.bf16.mxu1 %v2265_v20  ;;  %v1629_v20 = vld [vmem:[%s3111_s14 + $0x160] sm:$0xff]  ;;  %v1630_v21 = vld [vmem:[%s3111_s14 + $0x168] sm:$0xff]  ;;  %v1647_v37 = vld [vmem:[%s3111_s14 + $0x1f0] sm:$0xff] }
0x119d   :  { %2433 = vpow2.f32 %v1329_v22  ;;  %v1637_v22 = vld [vmem:[%s3111_s14 + $0x1a0] sm:$0xff] }
0x119e   :  { %2268 = vmatpush3.bf16.msra.mxu1 %v2267_v36  ;;  %v1648_v36 = vld [vmem:[%s3111_s14 + $0x1f8] sm:$0xff] }
0x11a6   :  { %v2432_v23 = vpop.eup %2431 }
0x11a7   :  { %v2434_v24 = vpop.eup %2433  ;;  %v1336_v19 = vsel %vm1300_vm5, %v2432_v23, 0.0 }
0x11a8   :  { %1337 = vadd.xlane.f32.xlu1 %v1336_v19  ;;  %v1333_v18 = vsel %vm1300_vm5, %v2434_v24, 0.0  ;;  %v1621_v19 = vld [vmem:[%s3111_s14 + $0x120] sm:$0xff] }
0x11a9   :  { %1334 = vadd.xlane.f32.xlu0 %v1333_v18  ;;  %v1611_v18 = vld [vmem:[%s3111_s14 + $0xd0] sm:$0xff]  ;;  %v2291_v50 = vpack.c.bf16 %v1622_v34, %v1621_v19 }
0x11aa   :  { %v2269_v1 = vpack.c.bf16 %v1612_v29, %v1611_v18  ;;  %v1631_v19 = vld [vmem:[%s3111_s14 + $0x170] sm:$0xff]  ;;  %v1632_v18 = vld [vmem:[%s3111_s14 + $0x178] sm:$0xff] }
0x11ab   :  { %v2311_v29 = vpack.c.bf16 %v1632_v18, %v1631_v19 }
0x11ac   :  { %2270 = vmatprep.subr.bf16.mxu1 %v2269_v1  ;;  %v1359_v1 = vld [vmem:[%s3110_s13] sm:$0xf]  ;;  %s2483_s13 = smov [#allocation2]  }
0x11ad   :  { %2272 = vmatpush3.bf16.msra.mxu1 %v2271_v39 }
0x11ae   :  { %2274 = vmatprep.subr.bf16.mxu1 %v2273_v51 }
0x11b1   :  { %2276 = vmatpush3.bf16.msra.mxu1 %v2275_v56 }
0x11b2   :  { %2278 = vmatprep.subr.bf16.mxu1 %v2277_v5 }
0x11b5   :  { %2280 = vmatpush3.bf16.msra.mxu1 %v2279_v61 }
0x1235   :  { %v1338_v3 = vpop.xlane.xlu1 %1337 }
0x1236   :  { %2435 = vrcp.f32 %v1338_v3  ;;  %v1335_v4 = vpop.xlane.xlu0 %1334  ;;  %v1625_v3 = vld [vmem:[%s3111_s14 + $0x140] sm:$0xff] }
0x1237   :  { %2437 = vrcp.f32 %v1335_v4  ;;  %v1626_v4 = vld [vmem:[%s3111_s14 + $0x148] sm:$0xff] }
0x1238   :  { %v2299_v8 = vpack.c.bf16 %v1626_v4, %v1625_v3 }
0x1240   :  { %v2436_v6 = vpop.eup %2435 }
0x1241   :  { %v2438_v9 = vpop.eup %2437  ;;  %v2927_v10 = vmul.f32 %v2436_v6, %v2432_v23  ;;  %v1638_v23 = vld [vmem:[%s3111_s14 + $0x1a8] sm:$0xff]  ;;  %v1643_v6 = vld [vmem:[%s3111_s14 + $0x1d0] sm:$0xff] }
0x1242   :  { %v2929_v11 = vmul.f32 %v2438_v9, %v2434_v24  ;;  %v2287_v24 = vpack.c.bf16 %v1620_v17, %v1619_v13  ;;  %v2289_v32 = vpack.c.bf16 %v1638_v23, %v1637_v22  ;;  %v2301_v9 = vpack.c.bf16 %v1644_v7, %v1643_v6  ;;  %v1628_v13 = vld [vmem:[%s3111_s14 + $0x158] sm:$0xff] }
0x1243   :  { %1560 = vperm.xlu1 %2376, %v2927_v10   ;;  %v2305_v17 = vpack.c.bf16 %v1646_v15, %v1645_v14  ;;  %v2307_v22 = vpack.c.bf16 %v1630_v21, %v1629_v20  ;;  %v2482_v23 = vmov 2  }
0x1244   :  { %1556 = vperm.xlu0 %2375, %v2929_v11   ;;  %2166 = vmatprep.mubr.msk.f32.mxu0 %vm1300_vm5, %v2929_v11 }
0x1245   :  { %2167 = vmatmul.mubr.msk.f32.vlgmr.msra.gmra.mrb[14].mxu0 %vm1300_vm5, %v2927_v10 }
0x1246   :  { %2284 = vmatpush3.bf16.msra.mxu0 %v2283_v12  ;;  %v1627_v12 = vld [vmem:[%s3111_s14 + $0x150] sm:$0xff]  ;;  %s1892_s14 = sshll.u32 %s2483_s13, 4  ;;  %s1893_s14 = int_to_ptr.vmem [resolvable:$true] %s1892_s14 }
0x1247   :  { %2377 = vset.pattern.permute.xlu1 %v2480_v31  ;;  %2286 = vmatprep.subr.bf16.mxu0 %v2285_v16  ;;  %v2303_v16 = vpack.c.bf16 %v1628_v13, %v1627_v12  ;;  %s2439_s29 = scalar_lea.vmem %s1893_s14, 256  ;;  %p2444_p1 = scmp.lt.s32.totalorder %s1893_s14, %s1893_s14 }
0x1248   :  { %1550 = vperm.xlu1 %2377, %v2927_v10   ;;  %2382 = vset.pattern.permute.xlu0 %v2481_v42  ;;  %p2440_p0 = scmp.ne.s32.totalorder %s1893_s14, %s2439_s29  ;;  %p2445_p2 = scmp.lt.s32.totalorder %s2439_s29, %s2439_s29 }
0x124a   :  { %2288 = vmatpush3.bf16.msra.mxu0 %v2287_v24  ;;  %v2309_v24 = vpack.c.bf16 %v1648_v36, %v1647_v37  ;;  %p2446_p3 = por %p2445_p2, %p2444_p1 }
0x124b   :  { %2290 = vmatprep.subr.bf16.mxu0 %v2289_v32 }
0x124c   :  { %2378 = vset.pattern.permute.xlu1 %v2481_v42  ;;  %p2447_p4 = pnand %p2446_p3, %p2440_p0 }
0x124d   :  { %1580 = vperm.xlu1 %2378, %v2927_v10  }
0x124e   :  { %2292 = vmatpush3.bf16.msra.mxu0 %v2291_v50 }
0x124f   :  { %2294 = vmatprep.subr.bf16.mxu0 %v2293_v52 }
0x1251   :  { %2379 = vset.pattern.permute.xlu1 %v2480_v31  ;;  %v1361_v31 = vlaneseq }
0x1252   :  { %1545 = vperm.xlu1 %2379, %v2929_v11   ;;  %2296 = vmatpush3.bf16.msra.mxu0 %v2295_v59 }
0x1253   :  { %2298 = vmatprep.subr.bf16.mxu0 %v2297_v2  ;;  %v1362_v32 = vshrl.u32 %v1361_v31, 7 }
0x1255   :  { %v1367_v34 = vsub.s32 1, %v1362_v32  ;;  %v1371_v53 = vsub.s32 2, %v1362_v32 }
0x1256   :  { %2380 = vset.pattern.permute.xlu1 %v2481_v42  ;;  %2300 = vmatpush3.bf16.msra.mxu0 %v2299_v8 }
0x1257   :  { %1576 = vperm.xlu1 %2380, %v2929_v11   ;;  %2302 = vmatprep.subr.bf16.mxu0 %v2301_v9  ;;  %v1368_v0 = vrot.slane %v1359_v1, %v1367_v34  ;;  %v1372_v57 = vrot.slane %v1359_v1, %v1371_v53 }
0x1259   :  { %v1450_v35 = vadd.f32 %v2827_v26, %v1368_v0  ;;  %v1456_v51 = vadd.f32 %v2834_v33, %v1368_v0 }
0x125a   :  { %2304 = vmatpush3.bf16.msra.mxu0 %v2303_v16 }
0x125b   :  { %2381 = vset.pattern.permute.xlu1 %v2482_v23  ;;  %2306 = vmatprep.subr.bf16.mxu0 %v2305_v17  ;;  %v1536_v39 = vmax.f32 %v1450_v35, 0.0  ;;  %v1540_v26 = vmax.f32 %v1456_v51, 0.0 }
0x125c   :  { %1566 = vperm.xlu1 %2381, %v2929_v11   ;;  %v1363_v11 = vsub.s32 0, %v1362_v32 }
0x125e   :  { %2308 = vmatpush3.bf16.msra.mxu0 %v2307_v22  ;;  %v1364_v49 = vrot.slane %v1359_v1, %v1363_v11 }
0x125f   :  { %2310 = vmatprep.subr.bf16.mxu0 %v2309_v24 }
0x1260   :  { %1570 = vperm.xlu1 %2381, %v2927_v10   ;;  %v1375_v10 = vsub.s32 3, %v1362_v32  ;;  %v1448_v50 = vadd.f32 %v2825_v25, %v1364_v49  ;;  %v1454_v55 = vadd.f32 %v2832_v30, %v1364_v49  ;;  %v1525_v25 = vadd.f32 %v2836_v43, %v1372_v57 }
0x1262   :  { %2312 = vmatpush3.bf16.msra.mxu0 %v2311_v29  ;;  %v1376_v52 = vrot.slane %v1359_v1, %v1375_v10  ;;  %v1535_v54 = vmax.f32 %v1448_v50, 0.0  ;;  %v1539_v60 = vmax.f32 %v1454_v55, 0.0  ;;  %v1537_v30 = vmax.f32 %v1525_v25, 0.0 }
0x1264   :  { %v1527_v56 = vadd.f32 %v2838_v44, %v1376_v52  ;;  %v1533_v2 = vadd.f32 %v2842_v47, %v1376_v52  ;;  %v1531_v44 = vadd.f32 %v2840_v45, %v1372_v57 }
0x1266   :  { %v1538_v62 = vmax.f32 %v1527_v56, 0.0  ;;  %v1542_v4 = vmax.f32 %v1533_v2, 0.0  ;;  %v1541_v7 = vmax.f32 %v1531_v44, 0.0 }
0x12c2   :  { %v1561_v40 = vpop.permute.xlu1 %1560 }
0x12c3   :  { %v1557_v41 = vpop.permute.xlu0 %1556  ;;  %v1564_v59 = vmul.f32 %v1561_v40, %v1540_v26 }
0x12c4   :  { %v1563_v42 = vmul.f32 %v1557_v41, %v1536_v39 }
0x12c6   :  { %1797 = vmatprep.mubr.f32.mxu1 %v1563_v42 }
0x12c7   :  { %v1551_v48 = vpop.permute.xlu1 %1550 }
0x12c8   :  { %v1554_v63 = vmul.f32 %v1551_v48, %v1539_v60 }
0x12cc   :  { %v1581_v46 = vpop.permute.xlu1 %1580 }
0x12cd   :  { %v1584_v6 = vmul.f32 %v1581_v46, %v1542_v4 }
0x12d1   :  { %v1546_v38 = vpop.permute.xlu1 %1545 }
0x12d2   :  { %v1553_v58 = vmul.f32 %v1546_v38, %v1535_v54 }
0x12d4   :  { %1798 = vmatmul.mubr.f32.vlgmr.msra.gmra.mrb[16].mxu1 %v1553_v58 }
0x12d5   :  { %1802 = vmatprep.mubr.f32.mxu1 %v1564_v59 }
0x12d6   :  { %v1577_v33 = vpop.permute.xlu1 %1576 }
0x12d7   :  { %v1583_v3 = vmul.f32 %v1577_v33, %v1538_v62 }
0x12d8   :  { %1803 = vmatmul.mubr.f32.gmra.mrb[18].mxu1 %v1554_v63 }
0x12d9   :  { %1872 = vmatprep.mubr.f32.mxu0 %v1583_v3 }
0x12db   :  { %v1567_v5 = vpop.permute.xlu1 %1566 }
0x12dc   :  { %v1573_v61 = vmul.f32 %v1567_v5, %v1537_v30 }
0x12de   :  { %1873 = vmatmul.mubr.f32.vlgmr.msra.gmra.mrb[16].mxu0 %v1573_v61 }
0x12df   :  { %v1571_v8 = vpop.permute.xlu1 %1570  ;;  %1877 = vmatprep.mubr.f32.mxu0 %v1584_v6 }
0x12e0   :  { %v1574_v9 = vmul.f32 %v1571_v8, %v1541_v7 }
0x12e2   :  { %1878 = vmatmul.mubr.f32.gmra.mrb[18].mxu0 %v1574_v9 }
0x1318   :  { %v2168_v43 = vpop.f32.mrb[14].mxu0 }
0x1319   :  { %v1724_v12 = vpop.f32.mrb[15].mxu0 }
0x13a7   :  { %v2031_v13 = vpop.f32.mrb[16].mxu1 }
0x13a8   :  { %v2032_v47 = vpop.f32.mrb[17].mxu1 }
0x13a9   :  { %v2033_v14 = vadd.f32 %v2032_v47, %v2031_v13 }
0x13ab   :  { %v1800_v15 = vadd.f32 %v2033_v14, %v1724_v12  ;;  %v2034_v16 = vpop.f32.mrb[18].mxu1 }
0x13ac   :  { %v2035_v17 = vpop.f32.mrb[19].mxu1 }
0x13ad   :  { %v2036_v20 = vadd.f32 %v2035_v17, %v2034_v16 }
0x13af   :  { %v1805_v45 = vadd.f32 %v2168_v43, %v2036_v20 }
0x13b1   :  { %v2069_v21 = vpop.f32.mrb[16].mxu0 }
0x13b2   :  { %v2070_v37 = vpop.f32.mrb[17].mxu0 }
0x13b3   :  { %v2071_v36 = vadd.f32 %v2070_v37, %v2069_v21 }
0x13b5   :  { %v1875_v22 = vadd.f32 %v2071_v36, %v1800_v15  ;;  %v2072_v23 = vpop.f32.mrb[18].mxu0 }
0x13b6   :  { %v2073_v24 = vpop.f32.mrb[19].mxu0 }
0x13b7   :  { %v1883_v19 = vadd.f32 %v1875_v22, %v2743_v28  ;;  %v2074_v18 = vadd.f32 %v2073_v24, %v2072_v23 }
0x13b9   :  { %1885 = vst.msk [vmem:[#allocation2] sm:$0xff] %vm58_vm0, %v1883_v19  ;;  %v1880_v29 = vadd.f32 %v2074_v18, %v1805_v45 }
0x13bb   :  { %v1884_v31 = vadd.f32 %v1880_v29, %v2741_v27 }
0x13bd   :  { %1886 = vst.msk [vmem:[#allocation2 + $0x8] sm:$0xff] %vm58_vm0, %v1884_v31 }
0x13be   :  { %2450 = shalt.err (!%p2447_p4)
}
0x13bf   :  { %s2451_s11 = scalar_lea.hbm %s3113_s16, 256 }
0x13c0   :  { %p2452_p5 = scmp.ne.s32.totalorder %s3113_s16, %s2451_s11  ;;  %p2455_p6 = scmp.lt.u32.totalorder %s2451_s11, %s3113_s16 }
0x13c2   :  { %p2457_p7 = pnand %p2455_p6, %p2452_p5 }
0x13c4   :  { %2460 = shalt.err (!%p2457_p7)
}
0x13c5   :  { %s2484_s3 = smov 128  }
0x13c6   :  { %1898 = dma.vmem_to_hbm [thread:$0]  %s1893_s14, 256, %s3113_s16, [#allocation3], %s2484_s3, %s2484_s3, %s2474_s19  }
0x13c7   :  { %2461 = dma.done.wait [#allocation3], 256  }
0x13c8   :  { %2462 = vsyncadd [#allocation3], 4294967040 }
0x13c9   :  { %1902 = vsyncpa [#allocation3], 1 }

</bundles_post_ra>
